<compile_context>
chip_gen: v6e
topology: v6e:2x2x1
jax: 0.10.0
libtpu: 0.0.40
codegen_flags: <defaults>
</compile_context>

<pallas_src>
import functools
import math

import jax
import jax.numpy as jnp
from jax.experimental import pallas as pl
from jax.experimental.pallas import tpu as pltpu

EPS = 1e-5


# ----------------------------- in-kernel math helpers -----------------------------
def _elu(x):
    # ELU(alpha=1); clamp exp arg so the unselected branch never produces inf.
    return jnp.where(x > 0, x, jnp.exp(jnp.minimum(x, 0.0)) - 1.0)


def _leaky(x, slope):
    return jnp.where(x > 0, x, slope * x)


def _dot(a, b):
    return jnp.dot(a, b, preferred_element_type=jnp.float32)


def _bn_train(x):
    # BatchNorm1d, training mode, gamma=1, beta=0, biased variance, stats over ALL rows.
    # xc hoisted and reused (review item: JAX does not CSE the mean broadcast).
    mean = jnp.mean(x, axis=0, keepdims=True)
    xc = x - mean
    var = jnp.mean(xc * xc, axis=0, keepdims=True)
    return xc * jax.lax.rsqrt(var + EPS)


def _bn_train_grouped(blocks):
    # BatchNorm1d training stats taken jointly over the UNION of rows of all per-head
    # blocks.  BN is row-order invariant, so this equals the reference's flattened
    # (B*E*H, C) / (B*N*H, C) BatchNorm exactly.
    inv_rows = 1.0 / float(sum(b.shape[0] for b in blocks))
    s = blocks[0].sum(axis=0, keepdims=True)
    for b in blocks[1:]:
        s = s + b.sum(axis=0, keepdims=True)
    mean = s * inv_rows
    centered = [b - mean for b in blocks]
    ss = (centered[0] * centered[0]).sum(axis=0, keepdims=True)
    for c in centered[1:]:
        ss = ss + (c * c).sum(axis=0, keepdims=True)
    inv_std = jax.lax.rsqrt(ss * inv_rows + EPS)
    return [c * inv_std for c in centered]


def _mlp3(x, w1, b1, w2, b2, w3, b3):
    # MLP: (fc -> BN -> ELU) x 3, dropout prob = 0 -> identity.
    h = _elu(_bn_train(_dot(x, w1) + b1))
    h = _elu(_bn_train(_dot(h, w2) + b2))
    return _elu(_bn_train(_dot(h, w3) + b3))


# ----------------------------- fused MLPEncoder kernel -----------------------------
def mlp_encoder_kernel(
    # inputs
    x_ref, rs_ref, rr_ref, rrt_ref,
    fh_w1, fh_b1, fh_w2, fh_b2, fh_w3, fh_b3,
    wproj_ref, afwd_ref, abwd_ref,
    fe_w1s, fe_w1t, fe_b1, fe_w2, fe_b2,
    fvg_w1, fvg_b1, fvg_w2, fvg_b2,
    fcv_w1, fcv_b1, fcv_w2, fcv_b2, fcv_w3, fcv_b3,
    # outputs
    xout_ref, vself_ref, alpha_ref,
    *, H):
    INV500 = 1.0 / 500.0

    # -------- f_h : MLP(n_in -> n_hid -> n_hid); BN stats over all B*N rows --------
    v_self = _mlp3(x_ref[...], fh_w1[...], fh_b1[...], fh_w2[...], fh_b2[...],
                   fh_w3[...], fh_b3[...])
    vself_ref[...] = v_self

    rs, rr, rrt = rs_ref[...], rr_ref[...], rrt_ref[...]   # block-diagonal (B*E,B*N)/(B*N,B*E)

    # -------- TemporalGATLayer: per-head projection, gather, attention, f_CG_e fc1 -----
    alphas, e_pre1 = [], []
    for h in range(H):
        # projection (no bias) + LeakyReLU(0.2); head-split weight -> no column slices.
        vp_h = _leaky(_dot(v_self, wproj_ref[h]), 0.2)          # (B*N, D)
        # node -> edge gather: one wide block-diagonal MXU matmul per direction.
        hs_h = _dot(rs, vp_h)                                   # (B*E, D)
        ht_h = _dot(rr, vp_h)
        # attention logits for this head (LeakyReLU(0.2) then *1/500, as in reference).
        aij = _leaky(jnp.sum(hs_h * afwd_ref[h], axis=-1, keepdims=True), 0.2) * INV500
        aji = _leaky(jnp.sum(ht_h * abwd_ref[h], axis=-1, keepdims=True), 0.2) * INV500
        amax = jnp.maximum(aij, aji)
        esij = jnp.exp(jnp.exp(aij - amax))      # reference's double-exp normalisation
        esji = jnp.exp(jnp.exp(aji - amax))
        inv = pl.reciprocal(esij + esji, approx=True)           # EUP slot
        a_ij, a_ji = esij * inv, esji * inv
        alphas.append(a_ij)
        # f_CG_e fc1 with its weight split into src/tgt halves -> no 2*D lane concat.
        e_pre1.append(_dot(a_ij * hs_h, fe_w1s[...]) + _dot(a_ji * ht_h, fe_w1t[...])
                      + fe_b1[...])

    alpha_ref[...] = jnp.concatenate(alphas, axis=1)            # (B*E, H), tiny output

    # -------- f_CG_e: BN over all B*E*H rows, LReLU(0.01), fc2, BN, then LReLU(0.2) ----
    e_h1 = [_leaky(x, 0.01) for x in _bn_train_grouped(e_pre1)]
    e_pre2 = [_dot(x, fe_w2[...]) + fe_b2[...] for x in e_h1]
    e_cg = [_leaky(x, 0.2) for x in _bn_train_grouped(e_pre2)]  # per head (B*E, D)

    # -------- edge -> node scatter + f_CG_v (GAT); BN over all B*N*H rows --------
    v_pre1 = [_dot(_dot(rrt, e_cg[h] * alphas[h]), fvg_w1[...]) + fvg_b1[...]
              for h in range(H)]
    v_h1 = [_leaky(x, 0.01) for x in _bn_train_grouped(v_pre1)]
    v_pre2 = [_dot(x, fvg_w2[...]) + fvg_b2[...] for x in v_h1]
    v_out = [_leaky(x, 0.2) for x in _bn_train_grouped(v_pre2)]  # per head (B*N, n_hid)

    # -------- encoder-level f_CG_v MLP; fc1 applied per head == fc1 on the head concat --
    x1 = fcv_b1[...]
    for h in range(H):
        x1 = x1 + _dot(v_out[h], fcv_w1[h])
    x1 = _elu(_bn_train(x1))
    x2 = _elu(_bn_train(_dot(x1, fcv_w2[...]) + fcv_b2[...]))
    xout_ref[...] = _elu(_bn_train(_dot(x2, fcv_w3[...]) + fcv_b3[...]))


# ----------------------------- wrapper -----------------------------
def _full_spec(shape):
    nd = len(shape)
    return pl.BlockSpec(shape, lambda i, _nd=nd: (0,) * _nd)


@functools.partial(jax.jit, static_argnames=("num_heads", "n_hid", "n_out"))
def mlp_encoder_forward(inputs, rel_rec, rel_send, params, *, num_heads, n_hid, n_out):
    """MLPEncoder.forward.  inputs: [B, N, T, F]; rel_rec / rel_send: [E, N] one-hot
    adjacency matrices shared across the batch (a leading batch dim is accepted and
    assumed identical per batch, so only one copy is ever used)."""
    B, N = inputs.shape[0], inputs.shape[1]
    if rel_rec.ndim == 3:              # graph shared across batch -> keep a single copy
        rel_rec, rel_send = rel_rec[0], rel_send[0]
    E = rel_rec.shape[0]
    H, D = num_heads, n_hid            # concat_heads=True -> out_dim == n_hid

    x = inputs.reshape(B * N, -1).astype(jnp.float32)

    # Block-diagonal (batch-folded) gather/scatter matrices: one wide MXU matmul replaces
    # the per-batch loop and keeps rows batch-major (no unaligned sublane slices).
    eye_b = jnp.eye(B, dtype=jnp.float32)
    rs_bd = jnp.kron(eye_b, rel_send.astype(jnp.float32))      # (B*E, B*N)
    rr_bd = jnp.kron(eye_b, rel_rec.astype(jnp.float32))       # (B*E, B*N)
    rrt_bd = rr_bd.T                                           # (B*N, B*E)

    # Head-split weights (done once in the wrapper) so the kernel never column-slices
    # activations and never concatenates along the lane axis.
    w_proj_h = params["w_proj"].reshape(n_hid, H, D).transpose(1, 0, 2)   # (H, n_hid, D)
    a_fwd = params["a_fwd"].reshape(H, 1, D)
    a_bwd = params["a_bwd"].reshape(H, 1, D)
    fe_w1, fe_b1, fe_w2, fe_b2 = params["f_cg_e"]
    fe_w1s, fe_w1t = fe_w1[:D, :], fe_w1[D:, :]                 # src / tgt halves of fc1
    fcv_w1, fcv_b1, fcv_w2, fcv_b2, fcv_w3, fcv_b3 = params["f_cg_v"]
    fcv_w1_h = fcv_w1.reshape(H, n_hid, n_hid)                  # per-head fc1 blocks

    args = (
        x, rs_bd, rr_bd, rrt_bd,
        *params["f_h"],
        w_proj_h, a_fwd, a_bwd,
        fe_w1s, fe_w1t, fe_b1, fe_w2, fe_b2,
        *params["f_cg_v_gat"],
        fcv_w1_h, fcv_b1, fcv_w2, fcv_b2, fcv_w3, fcv_b3,
    )

    kernel = functools.partial(mlp_encoder_kernel, H=H)
    # Single grid step with full-array blocks: BN statistics span all rows, so the kernel
    # cannot be batch-tiled.  VMEM footprint is tiny at these shapes (no vmem_limit_bytes
    # override / Buffered(1) needed; revisit when scaling up, esp. on v7x's 64 MiB).
    x_out, v_self, alpha = pl.pallas_call(
        kernel,
        out_shape=(
            jax.ShapeDtypeStruct((B * N, n_out), jnp.float32),
            jax.ShapeDtypeStruct((B * N, n_hid), jnp.float32),
            jax.ShapeDtypeStruct((B * E, H), jnp.float32),
        ),
        grid=(1,),
        in_specs=[_full_spec(a.shape) for a in args],
        out_specs=(
            _full_spec((B * N, n_out)),
            _full_spec((B * N, n_hid)),
            _full_spec((B * E, H)),
        ),
        compiler_params=pltpu.CompilerParams(dimension_semantics=("arbitrary",)),
    )(*args)

    return (x_out.reshape(B, N, n_out),
            v_self.reshape(B, N, n_hid),
            alpha.reshape(B, E, H))


# ----------------------------- deterministic parameter init -----------------------------
def _xavier_normal(key, shape):
    std = math.sqrt(2.0 / (shape[0] + shape[1]))
    return (std * jax.random.normal(key, shape)).astype(jnp.float32)


def make_params(key, n_in, n_hid, n_out, num_heads):
    H, D = num_heads, n_hid
    keys = jax.random.split(key, 7)

    def mlp_params(k, a, b, c):
        k1, k2, k3 = jax.random.split(k, 3)
        return (_xavier_normal(k1, (a, b)), jnp.full((1, b), 0.1, jnp.float32),
                _xavier_normal(k2, (b, b)), jnp.full((1, b), 0.1, jnp.float32),
                _xavier_normal(k3, (b, c)), jnp.full((1, c), 0.1, jnp.float32))

    def seq_params(k, a, b, c):
        k1, k2, k3, k4 = jax.random.split(k, 4)
        return (_xavier_normal(k1, (a, b)),
                (0.01 * jax.random.normal(k2, (1, b))).astype(jnp.float32),
                _xavier_normal(k3, (b, c)),
                (0.01 * jax.random.normal(k4, (1, c))).astype(jnp.float32))

    return dict(
        f_h=mlp_params(keys[0], n_in, n_hid, n_hid),
        w_proj=_xavier_normal(keys[1], (n_hid, H * D)),
        a_fwd=_xavier_normal(keys[2], (H, D)),
        a_bwd=_xavier_normal(keys[3], (H, D)),
        f_cg_e=seq_params(keys[4], 2 * D, D, D),
        f_cg_v_gat=seq_params(keys[5], D, n_hid, n_hid),
        f_cg_v=mlp_params(keys[6], H * D, n_hid, n_out),
    )


if __name__ == "__main__":
    key = jax.random.PRNGKey(0)
    B, N, T, Fdim = 2, 4, 4, 2              # inputs [B, N, T, F]
    num_heads, n_hid, n_out = 2, 16, 8
    n_in = T * Fdim

    k_in, k_p = jax.random.split(key)
    inputs = jax.random.normal(k_in, (B, N, T, Fdim), dtype=jnp.float32)

    # fully-connected directed graph without self-loops: E = N*(N-1) edges; a single (E, N)
    # one-hot matrix per direction, shared across the batch.
    edges = [(i, j) for i in range(N) for j in range(N) if i != j]
    E = len(edges)
    send_idx = jnp.array([i for i, _ in edges])
    recv_idx = jnp.array([j for _, j in edges])
    rel_send = jnp.zeros((E, N), jnp.float32).at[jnp.arange(E), send_idx].set(1.0)
    rel_rec = jnp.zeros((E, N), jnp.float32).at[jnp.arange(E), recv_idx].set(1.0)

    params = make_params(k_p, n_in, n_hid, n_out, num_heads)

    x_out, v_self, alpha_ij = mlp_encoder_forward(
        inputs, rel_rec, rel_send, params,
        num_heads=num_heads, n_hid=n_hid, n_out=n_out)
    jax.block_until_ready((x_out, v_self, alpha_ij))

    assert x_out.shape == (B, N, n_out)
    assert v_self.shape == (B, N, n_hid)
    assert alpha_ij.shape == (B, E, num_heads)
    assert bool(jnp.all(jnp.isfinite(x_out)))
    assert bool(jnp.all(jnp.isfinite(v_self)))
    assert bool(jnp.all(jnp.isfinite(alpha_ij)))
    print("KERNEL_OK")
</pallas_src>

<mosaic_0001>
module attributes {stable_mosaic.version = 11 : i64} {
  func.func @mlp_encoder_kernel(%arg0: i32, %arg1: memref<8x8xf32, #tpu.memory_space<vmem>>, %arg2: memref<24x8xf32, #tpu.memory_space<vmem>>, %arg3: memref<24x8xf32, #tpu.memory_space<vmem>>, %arg4: memref<8x24xf32, #tpu.memory_space<vmem>>, %arg5: memref<8x16xf32, #tpu.memory_space<vmem>>, %arg6: memref<1x16xf32, #tpu.memory_space<vmem>>, %arg7: memref<16x16xf32, #tpu.memory_space<vmem>>, %arg8: memref<1x16xf32, #tpu.memory_space<vmem>>, %arg9: memref<16x16xf32, #tpu.memory_space<vmem>>, %arg10: memref<1x16xf32, #tpu.memory_space<vmem>>, %arg11: memref<2x16x16xf32, #tpu.memory_space<vmem>>, %arg12: memref<2x1x16xf32, #tpu.memory_space<vmem>>, %arg13: memref<2x1x16xf32, #tpu.memory_space<vmem>>, %arg14: memref<16x16xf32, #tpu.memory_space<vmem>>, %arg15: memref<16x16xf32, #tpu.memory_space<vmem>>, %arg16: memref<1x16xf32, #tpu.memory_space<vmem>>, %arg17: memref<16x16xf32, #tpu.memory_space<vmem>>, %arg18: memref<1x16xf32, #tpu.memory_space<vmem>>, %arg19: memref<16x16xf32, #tpu.memory_space<vmem>>, %arg20: memref<1x16xf32, #tpu.memory_space<vmem>>, %arg21: memref<16x16xf32, #tpu.memory_space<vmem>>, %arg22: memref<1x16xf32, #tpu.memory_space<vmem>>, %arg23: memref<2x16x16xf32, #tpu.memory_space<vmem>>, %arg24: memref<1x16xf32, #tpu.memory_space<vmem>>, %arg25: memref<16x16xf32, #tpu.memory_space<vmem>>, %arg26: memref<1x16xf32, #tpu.memory_space<vmem>>, %arg27: memref<16x8xf32, #tpu.memory_space<vmem>>, %arg28: memref<1x8xf32, #tpu.memory_space<vmem>>, %arg29: memref<8x8xf32, #tpu.memory_space<vmem>>, %arg30: memref<8x16xf32, #tpu.memory_space<vmem>>, %arg31: memref<24x2xf32, #tpu.memory_space<vmem>>) attributes {dimension_semantics = [#tpu.dimension_semantics<arbitrary>], iteration_bounds = array<i64: 1>, scalar_prefetch = 0 : i64, scratch_operands = 0 : i64, tpu.core_type = #tpu.core_type<tc>, window_params = [{pipeline_mode = #tpu.pipeline_mode<synchronous>, transform_indices = @transform_0, window_bounds = array<i64: 8, 8>}, {pipeline_mode = #tpu.pipeline_mode<synchronous>, transform_indices = @transform_1, window_bounds = array<i64: 24, 8>}, {pipeline_mode = #tpu.pipeline_mode<synchronous>, transform_indices = @transform_2, window_bounds = array<i64: 24, 8>}, {pipeline_mode = #tpu.pipeline_mode<synchronous>, transform_indices = @transform_3, window_bounds = array<i64: 8, 24>}, {pipeline_mode = #tpu.pipeline_mode<synchronous>, transform_indices = @transform_4, window_bounds = array<i64: 8, 16>}, {pipeline_mode = #tpu.pipeline_mode<synchronous>, transform_indices = @transform_5, window_bounds = array<i64: 1, 16>}, {pipeline_mode = #tpu.pipeline_mode<synchronous>, transform_indices = @transform_6, window_bounds = array<i64: 16, 16>}, {pipeline_mode = #tpu.pipeline_mode<synchronous>, transform_indices = @transform_7, window_bounds = array<i64: 1, 16>}, {pipeline_mode = #tpu.pipeline_mode<synchronous>, transform_indices = @transform_8, window_bounds = array<i64: 16, 16>}, {pipeline_mode = #tpu.pipeline_mode<synchronous>, transform_indices = @transform_9, window_bounds = array<i64: 1, 16>}, {pipeline_mode = #tpu.pipeline_mode<synchronous>, transform_indices = @transform_10, window_bounds = array<i64: 2, 16, 16>}, {pipeline_mode = #tpu.pipeline_mode<synchronous>, transform_indices = @transform_11, window_bounds = array<i64: 2, 1, 16>}, {pipeline_mode = #tpu.pipeline_mode<synchronous>, transform_indices = @transform_12, window_bounds = array<i64: 2, 1, 16>}, {pipeline_mode = #tpu.pipeline_mode<synchronous>, transform_indices = @transform_13, window_bounds = array<i64: 16, 16>}, {pipeline_mode = #tpu.pipeline_mode<synchronous>, transform_indices = @transform_14, window_bounds = array<i64: 16, 16>}, {pipeline_mode = #tpu.pipeline_mode<synchronous>, transform_indices = @transform_15, window_bounds = array<i64: 1, 16>}, {pipeline_mode = #tpu.pipeline_mode<synchronous>, transform_indices = @transform_16, window_bounds = array<i64: 16, 16>}, {pipeline_mode = #tpu.pipeline_mode<synchronous>, transform_indices = @transform_17, window_bounds = array<i64: 1, 16>}, {pipeline_mode = #tpu.pipeline_mode<synchronous>, transform_indices = @transform_18, window_bounds = array<i64: 16, 16>}, {pipeline_mode = #tpu.pipeline_mode<synchronous>, transform_indices = @transform_19, window_bounds = array<i64: 1, 16>}, {pipeline_mode = #tpu.pipeline_mode<synchronous>, transform_indices = @transform_20, window_bounds = array<i64: 16, 16>}, {pipeline_mode = #tpu.pipeline_mode<synchronous>, transform_indices = @transform_21, window_bounds = array<i64: 1, 16>}, {pipeline_mode = #tpu.pipeline_mode<synchronous>, transform_indices = @transform_22, window_bounds = array<i64: 2, 16, 16>}, {pipeline_mode = #tpu.pipeline_mode<synchronous>, transform_indices = @transform_23, window_bounds = array<i64: 1, 16>}, {pipeline_mode = #tpu.pipeline_mode<synchronous>, transform_indices = @transform_24, window_bounds = array<i64: 16, 16>}, {pipeline_mode = #tpu.pipeline_mode<synchronous>, transform_indices = @transform_25, window_bounds = array<i64: 1, 16>}, {pipeline_mode = #tpu.pipeline_mode<synchronous>, transform_indices = @transform_26, window_bounds = array<i64: 16, 8>}, {pipeline_mode = #tpu.pipeline_mode<synchronous>, transform_indices = @transform_27, window_bounds = array<i64: 1, 8>}, {pipeline_mode = #tpu.pipeline_mode<synchronous>, transform_indices = @transform_28, window_bounds = array<i64: 8, 8>}, {pipeline_mode = #tpu.pipeline_mode<synchronous>, transform_indices = @transform_29, window_bounds = array<i64: 8, 16>}, {pipeline_mode = #tpu.pipeline_mode<synchronous>, transform_indices = @transform_30, window_bounds = array<i64: 24, 2>}]} {
    %c0 = arith.constant 0 : index
    %c0_0 = arith.constant 0 : index
    %0 = vector.load %arg1[%c0, %c0_0] : memref<8x8xf32, #tpu.memory_space<vmem>>, vector<8x8xf32>
    %c0_1 = arith.constant 0 : index
    %c0_2 = arith.constant 0 : index
    %1 = vector.load %arg5[%c0_1, %c0_2] : memref<8x16xf32, #tpu.memory_space<vmem>>, vector<8x16xf32>
    %c0_3 = arith.constant 0 : index
    %c0_4 = arith.constant 0 : index
    %2 = vector.load %arg6[%c0_3, %c0_4] : memref<1x16xf32, #tpu.memory_space<vmem>>, vector<1x16xf32>
    %c0_5 = arith.constant 0 : index
    %c0_6 = arith.constant 0 : index
    %3 = vector.load %arg7[%c0_5, %c0_6] : memref<16x16xf32, #tpu.memory_space<vmem>>, vector<16x16xf32>
    %c0_7 = arith.constant 0 : index
    %c0_8 = arith.constant 0 : index
    %4 = vector.load %arg8[%c0_7, %c0_8] : memref<1x16xf32, #tpu.memory_space<vmem>>, vector<1x16xf32>
    %c0_9 = arith.constant 0 : index
    %c0_10 = arith.constant 0 : index
    %5 = vector.load %arg9[%c0_9, %c0_10] : memref<16x16xf32, #tpu.memory_space<vmem>>, vector<16x16xf32>
    %c0_11 = arith.constant 0 : index
    %c0_12 = arith.constant 0 : index
    %6 = vector.load %arg10[%c0_11, %c0_12] : memref<1x16xf32, #tpu.memory_space<vmem>>, vector<1x16xf32>
    %cst = arith.constant dense<0.000000e+00> : vector<8x16xf32>
    %7 = tpu.matmul %0, %1, %cst {dimension_numbers = #tpu.dot_dimension_numbers<[1], [0], [0], [1], [0, 0, 1, 1], [], []>} : vector<8x8xf32>, vector<8x16xf32>, vector<8x16xf32> -> vector<8x16xf32>
    %8 = vector.broadcast %2 : vector<1x16xf32> to vector<8x16xf32>
    %9 = arith.addf %7, %8 : vector<8x16xf32>
    %cst_13 = arith.constant dense<0.000000e+00> : vector<16xf32>
    %10 = vector.multi_reduction <add>, %9, %cst_13 [0] : vector<8x16xf32> to vector<16xf32>
    %11 = vector.shape_cast %10 : vector<16xf32> to vector<1x16xf32>
    %cst_14 = arith.constant 8.000000e+00 : f32
    %12 = vector.broadcast %cst_14 : f32 to vector<1x16xf32>
    %13 = arith.divf %11, %12 : vector<1x16xf32>
    %14 = vector.broadcast %13 : vector<1x16xf32> to vector<8x16xf32>
    %15 = arith.subf %9, %14 : vector<8x16xf32>
    %16 = arith.mulf %15, %15 : vector<8x16xf32>
    %cst_15 = arith.constant dense<0.000000e+00> : vector<16xf32>
    %17 = vector.multi_reduction <add>, %16, %cst_15 [0] : vector<8x16xf32> to vector<16xf32>
    %18 = vector.shape_cast %17 : vector<16xf32> to vector<1x16xf32>
    %cst_16 = arith.constant 8.000000e+00 : f32
    %19 = vector.broadcast %cst_16 : f32 to vector<1x16xf32>
    %20 = arith.divf %18, %19 : vector<1x16xf32>
    %cst_17 = arith.constant 9.99999974E-6 : f32
    %21 = vector.broadcast %cst_17 : f32 to vector<1x16xf32>
    %22 = arith.addf %20, %21 : vector<1x16xf32>
    %23 = math.rsqrt %22 : vector<1x16xf32>
    %24 = vector.broadcast %23 : vector<1x16xf32> to vector<8x16xf32>
    %25 = arith.mulf %15, %24 : vector<8x16xf32>
    %cst_18 = arith.constant 0.000000e+00 : f32
    %26 = vector.broadcast %cst_18 : f32 to vector<8x16xf32>
    %27 = arith.cmpf ogt, %25, %26 : vector<8x16xf32>
    %cst_19 = arith.constant 0.000000e+00 : f32
    %28 = vector.broadcast %cst_19 : f32 to vector<8x16xf32>
    %29 = arith.minimumf %25, %28 : vector<8x16xf32>
    %30 = math.exp %29 : vector<8x16xf32>
    %cst_20 = arith.constant 1.000000e+00 : f32
    %31 = vector.broadcast %cst_20 : f32 to vector<8x16xf32>
    %32 = arith.subf %30, %31 : vector<8x16xf32>
    %33 = arith.select %27, %25, %32 : vector<8x16xi1>, vector<8x16xf32>
    %cst_21 = arith.constant dense<0.000000e+00> : vector<8x16xf32>
    %34 = tpu.matmul %33, %3, %cst_21 {dimension_numbers = #tpu.dot_dimension_numbers<[1], [0], [0], [1], [0, 0, 1, 1], [], []>} : vector<8x16xf32>, vector<16x16xf32>, vector<8x16xf32> -> vector<8x16xf32>
    %35 = vector.broadcast %4 : vector<1x16xf32> to vector<8x16xf32>
    %36 = arith.addf %34, %35 : vector<8x16xf32>
    %cst_22 = arith.constant dense<0.000000e+00> : vector<16xf32>
    %37 = vector.multi_reduction <add>, %36, %cst_22 [0] : vector<8x16xf32> to vector<16xf32>
    %38 = vector.shape_cast %37 : vector<16xf32> to vector<1x16xf32>
    %cst_23 = arith.constant 8.000000e+00 : f32
    %39 = vector.broadcast %cst_23 : f32 to vector<1x16xf32>
    %40 = arith.divf %38, %39 : vector<1x16xf32>
    %41 = vector.broadcast %40 : vector<1x16xf32> to vector<8x16xf32>
    %42 = arith.subf %36, %41 : vector<8x16xf32>
    %43 = arith.mulf %42, %42 : vector<8x16xf32>
    %cst_24 = arith.constant dense<0.000000e+00> : vector<16xf32>
    %44 = vector.multi_reduction <add>, %43, %cst_24 [0] : vector<8x16xf32> to vector<16xf32>
    %45 = vector.shape_cast %44 : vector<16xf32> to vector<1x16xf32>
    %cst_25 = arith.constant 8.000000e+00 : f32
    %46 = vector.broadcast %cst_25 : f32 to vector<1x16xf32>
    %47 = arith.divf %45, %46 : vector<1x16xf32>
    %cst_26 = arith.constant 9.99999974E-6 : f32
    %48 = vector.broadcast %cst_26 : f32 to vector<1x16xf32>
    %49 = arith.addf %47, %48 : vector<1x16xf32>
    %50 = math.rsqrt %49 : vector<1x16xf32>
    %51 = vector.broadcast %50 : vector<1x16xf32> to vector<8x16xf32>
    %52 = arith.mulf %42, %51 : vector<8x16xf32>
    %cst_27 = arith.constant 0.000000e+00 : f32
    %53 = vector.broadcast %cst_27 : f32 to vector<8x16xf32>
    %54 = arith.cmpf ogt, %52, %53 : vector<8x16xf32>
    %cst_28 = arith.constant 0.000000e+00 : f32
    %55 = vector.broadcast %cst_28 : f32 to vector<8x16xf32>
    %56 = arith.minimumf %52, %55 : vector<8x16xf32>
    %57 = math.exp %56 : vector<8x16xf32>
    %cst_29 = arith.constant 1.000000e+00 : f32
    %58 = vector.broadcast %cst_29 : f32 to vector<8x16xf32>
    %59 = arith.subf %57, %58 : vector<8x16xf32>
    %60 = arith.select %54, %52, %59 : vector<8x16xi1>, vector<8x16xf32>
    %cst_30 = arith.constant dense<0.000000e+00> : vector<8x16xf32>
    %61 = tpu.matmul %60, %5, %cst_30 {dimension_numbers = #tpu.dot_dimension_numbers<[1], [0], [0], [1], [0, 0, 1, 1], [], []>} : vector<8x16xf32>, vector<16x16xf32>, vector<8x16xf32> -> vector<8x16xf32>
    %62 = vector.broadcast %6 : vector<1x16xf32> to vector<8x16xf32>
    %63 = arith.addf %61, %62 : vector<8x16xf32>
    %cst_31 = arith.constant dense<0.000000e+00> : vector<16xf32>
    %64 = vector.multi_reduction <add>, %63, %cst_31 [0] : vector<8x16xf32> to vector<16xf32>
    %65 = vector.shape_cast %64 : vector<16xf32> to vector<1x16xf32>
    %cst_32 = arith.constant 8.000000e+00 : f32
    %66 = vector.broadcast %cst_32 : f32 to vector<1x16xf32>
    %67 = arith.divf %65, %66 : vector<1x16xf32>
    %68 = vector.broadcast %67 : vector<1x16xf32> to vector<8x16xf32>
    %69 = arith.subf %63, %68 : vector<8x16xf32>
    %70 = arith.mulf %69, %69 : vector<8x16xf32>
    %cst_33 = arith.constant dense<0.000000e+00> : vector<16xf32>
    %71 = vector.multi_reduction <add>, %70, %cst_33 [0] : vector<8x16xf32> to vector<16xf32>
    %72 = vector.shape_cast %71 : vector<16xf32> to vector<1x16xf32>
    %cst_34 = arith.constant 8.000000e+00 : f32
    %73 = vector.broadcast %cst_34 : f32 to vector<1x16xf32>
    %74 = arith.divf %72, %73 : vector<1x16xf32>
    %cst_35 = arith.constant 9.99999974E-6 : f32
    %75 = vector.broadcast %cst_35 : f32 to vector<1x16xf32>
    %76 = arith.addf %74, %75 : vector<1x16xf32>
    %77 = math.rsqrt %76 : vector<1x16xf32>
    %78 = vector.broadcast %77 : vector<1x16xf32> to vector<8x16xf32>
    %79 = arith.mulf %69, %78 : vector<8x16xf32>
    %cst_36 = arith.constant 0.000000e+00 : f32
    %80 = vector.broadcast %cst_36 : f32 to vector<8x16xf32>
    %81 = arith.cmpf ogt, %79, %80 : vector<8x16xf32>
    %cst_37 = arith.constant 0.000000e+00 : f32
    %82 = vector.broadcast %cst_37 : f32 to vector<8x16xf32>
    %83 = arith.minimumf %79, %82 : vector<8x16xf32>
    %84 = math.exp %83 : vector<8x16xf32>
    %cst_38 = arith.constant 1.000000e+00 : f32
    %85 = vector.broadcast %cst_38 : f32 to vector<8x16xf32>
    %86 = arith.subf %84, %85 : vector<8x16xf32>
    %87 = arith.select %81, %79, %86 : vector<8x16xi1>, vector<8x16xf32>
    %c0_39 = arith.constant 0 : index
    %c0_40 = arith.constant 0 : index
    %88 = vector.load %arg30[%c0_39, %c0_40] : memref<8x16xf32, #tpu.memory_space<vmem>>, vector<8x16xf32>
    tpu.vector_store %arg30[%c0_39, %c0_40], %87 {strides = array<i32>} : memref<8x16xf32, #tpu.memory_space<vmem>>, vector<8x16xf32>,
    %c0_41 = arith.constant 0 : index
    %c0_42 = arith.constant 0 : index
    %89 = vector.load %arg2[%c0_41, %c0_42] : memref<24x8xf32, #tpu.memory_space<vmem>>, vector<24x8xf32>
    %c0_43 = arith.constant 0 : index
    %c0_44 = arith.constant 0 : index
    %90 = vector.load %arg3[%c0_43, %c0_44] : memref<24x8xf32, #tpu.memory_space<vmem>>, vector<24x8xf32>
    %c0_45 = arith.constant 0 : index
    %c0_46 = arith.constant 0 : index
    %91 = vector.load %arg4[%c0_45, %c0_46] : memref<8x24xf32, #tpu.memory_space<vmem>>, vector<8x24xf32>
    %c0_47 = arith.constant 0 : index
    %c0_48 = arith.constant 0 : index
    %c0_49 = arith.constant 0 : index
    %92 = vector.load %arg11[%c0_47, %c0_48, %c0_49] : memref<2x16x16xf32, #tpu.memory_space<vmem>>, vector<1x16x16xf32>
    %93 = vector.shape_cast %92 : vector<1x16x16xf32> to vector<16x16xf32>
    %cst_50 = arith.constant dense<0.000000e+00> : vector<8x16xf32>
    %94 = tpu.matmul %87, %93, %cst_50 {dimension_numbers = #tpu.dot_dimension_numbers<[1], [0], [0], [1], [0, 0, 1, 1], [], []>} : vector<8x16xf32>, vector<16x16xf32>, vector<8x16xf32> -> vector<8x16xf32>
    %cst_51 = arith.constant 0.000000e+00 : f32
    %95 = vector.broadcast %cst_51 : f32 to vector<8x16xf32>
    %96 = arith.cmpf ogt, %94, %95 : vector<8x16xf32>
    %cst_52 = arith.constant 2.000000e-01 : f32
    %97 = vector.broadcast %cst_52 : f32 to vector<8x16xf32>
    %98 = arith.mulf %97, %94 : vector<8x16xf32>
    %99 = arith.select %96, %94, %98 : vector<8x16xi1>, vector<8x16xf32>
    %cst_53 = arith.constant dense<0.000000e+00> : vector<24x16xf32>
    %100 = tpu.matmul %89, %99, %cst_53 {dimension_numbers = #tpu.dot_dimension_numbers<[1], [0], [0], [1], [0, 0, 1, 1], [], []>} : vector<24x8xf32>, vector<8x16xf32>, vector<24x16xf32> -> vector<24x16xf32>
    %cst_54 = arith.constant dense<0.000000e+00> : vector<24x16xf32>
    %101 = tpu.matmul %90, %99, %cst_54 {dimension_numbers = #tpu.dot_dimension_numbers<[1], [0], [0], [1], [0, 0, 1, 1], [], []>} : vector<24x8xf32>, vector<8x16xf32>, vector<24x16xf32> -> vector<24x16xf32>
    %c0_55 = arith.constant 0 : index
    %c0_56 = arith.constant 0 : index
    %c0_57 = arith.constant 0 : index
    %102 = vector.load %arg12[%c0_55, %c0_56, %c0_57] : memref<2x1x16xf32, #tpu.memory_space<vmem>>, vector<1x1x16xf32>
    %103 = vector.shape_cast %102 : vector<1x1x16xf32> to vector<1x16xf32>
    %104 = vector.broadcast %103 : vector<1x16xf32> to vector<24x16xf32>
    %105 = arith.mulf %100, %104 : vector<24x16xf32>
    %cst_58 = arith.constant dense<0.000000e+00> : vector<24xf32>
    %106 = vector.multi_reduction <add>, %105, %cst_58 [1] : vector<24x16xf32> to vector<24xf32>
    %107 = vector.shape_cast %106 : vector<24xf32> to vector<24x1xf32>
    %cst_59 = arith.constant 0.000000e+00 : f32
    %108 = vector.broadcast %cst_59 : f32 to vector<24x1xf32>
    %109 = arith.cmpf ogt, %107, %108 : vector<24x1xf32>
    %cst_60 = arith.constant 2.000000e-01 : f32
    %110 = vector.broadcast %cst_60 : f32 to vector<24x1xf32>
    %111 = arith.mulf %110, %107 : vector<24x1xf32>
    %112 = arith.select %109, %107, %111 : vector<24x1xi1>, vector<24x1xf32>
    %cst_61 = arith.constant 2.000000e-03 : f32
    %113 = vector.broadcast %cst_61 : f32 to vector<24x1xf32>
    %114 = arith.mulf %112, %113 : vector<24x1xf32>
    %c0_62 = arith.constant 0 : index
    %c0_63 = arith.constant 0 : index
    %c0_64 = arith.constant 0 : index
    %115 = vector.load %arg13[%c0_62, %c0_63, %c0_64] : memref<2x1x16xf32, #tpu.memory_space<vmem>>, vector<1x1x16xf32>
    %116 = vector.shape_cast %115 : vector<1x1x16xf32> to vector<1x16xf32>
    %117 = vector.broadcast %116 : vector<1x16xf32> to vector<24x16xf32>
    %118 = arith.mulf %101, %117 : vector<24x16xf32>
    %cst_65 = arith.constant dense<0.000000e+00> : vector<24xf32>
    %119 = vector.multi_reduction <add>, %118, %cst_65 [1] : vector<24x16xf32> to vector<24xf32>
    %120 = vector.shape_cast %119 : vector<24xf32> to vector<24x1xf32>
    %cst_66 = arith.constant 0.000000e+00 : f32
    %121 = vector.broadcast %cst_66 : f32 to vector<24x1xf32>
    %122 = arith.cmpf ogt, %120, %121 : vector<24x1xf32>
    %cst_67 = arith.constant 2.000000e-01 : f32
    %123 = vector.broadcast %cst_67 : f32 to vector<24x1xf32>
    %124 = arith.mulf %123, %120 : vector<24x1xf32>
    %125 = arith.select %122, %120, %124 : vector<24x1xi1>, vector<24x1xf32>
    %cst_68 = arith.constant 2.000000e-03 : f32
    %126 = vector.broadcast %cst_68 : f32 to vector<24x1xf32>
    %127 = arith.mulf %125, %126 : vector<24x1xf32>
    %128 = arith.maximumf %114, %127 : vector<24x1xf32>
    %129 = arith.subf %114, %128 : vector<24x1xf32>
    %130 = math.exp %129 : vector<24x1xf32>
    %131 = math.exp %130 : vector<24x1xf32>
    %132 = arith.subf %127, %128 : vector<24x1xf32>
    %133 = math.exp %132 : vector<24x1xf32>
    %134 = math.exp %133 : vector<24x1xf32>
    %135 = arith.addf %131, %134 : vector<24x1xf32>
    %136 = tpu.reciprocal %135 {approx = true} : vector<24x1xf32> -> vector<24x1xf32>
    %137 = arith.mulf %131, %136 : vector<24x1xf32>
    %138 = arith.mulf %134, %136 : vector<24x1xf32>
    %139 = vector.broadcast %137 : vector<24x1xf32> to vector<24x16xf32>
    %140 = arith.mulf %139, %100 : vector<24x16xf32>
    %c0_69 = arith.constant 0 : index
    %c0_70 = arith.constant 0 : index
    %141 = vector.load %arg14[%c0_69, %c0_70] : memref<16x16xf32, #tpu.memory_space<vmem>>, vector<16x16xf32>
    %cst_71 = arith.constant dense<0.000000e+00> : vector<24x16xf32>
    %142 = tpu.matmul %140, %141, %cst_71 {dimension_numbers = #tpu.dot_dimension_numbers<[1], [0], [0], [1], [0, 0, 1, 1], [], []>} : vector<24x16xf32>, vector<16x16xf32>, vector<24x16xf32> -> vector<24x16xf32>
    %143 = vector.broadcast %138 : vector<24x1xf32> to vector<24x16xf32>
    %144 = arith.mulf %143, %101 : vector<24x16xf32>
    %c0_72 = arith.constant 0 : index
    %c0_73 = arith.constant 0 : index
    %145 = vector.load %arg15[%c0_72, %c0_73] : memref<16x16xf32, #tpu.memory_space<vmem>>, vector<16x16xf32>
    %cst_74 = arith.constant dense<0.000000e+00> : vector<24x16xf32>
    %146 = tpu.matmul %144, %145, %cst_74 {dimension_numbers = #tpu.dot_dimension_numbers<[1], [0], [0], [1], [0, 0, 1, 1], [], []>} : vector<24x16xf32>, vector<16x16xf32>, vector<24x16xf32> -> vector<24x16xf32>
    %147 = arith.addf %142, %146 : vector<24x16xf32>
    %c0_75 = arith.constant 0 : index
    %c0_76 = arith.constant 0 : index
    %148 = vector.load %arg16[%c0_75, %c0_76] : memref<1x16xf32, #tpu.memory_space<vmem>>, vector<1x16xf32>
    %149 = vector.broadcast %148 : vector<1x16xf32> to vector<24x16xf32>
    %150 = arith.addf %147, %149 : vector<24x16xf32>
    %c1 = arith.constant 1 : index
    %c0_77 = arith.constant 0 : index
    %c0_78 = arith.constant 0 : index
    %151 = vector.load %arg11[%c1, %c0_77, %c0_78] : memref<2x16x16xf32, #tpu.memory_space<vmem>>, vector<1x16x16xf32>
    %152 = vector.shape_cast %151 : vector<1x16x16xf32> to vector<16x16xf32>
    %cst_79 = arith.constant dense<0.000000e+00> : vector<8x16xf32>
    %153 = tpu.matmul %87, %152, %cst_79 {dimension_numbers = #tpu.dot_dimension_numbers<[1], [0], [0], [1], [0, 0, 1, 1], [], []>} : vector<8x16xf32>, vector<16x16xf32>, vector<8x16xf32> -> vector<8x16xf32>
    %cst_80 = arith.constant 0.000000e+00 : f32
    %154 = vector.broadcast %cst_80 : f32 to vector<8x16xf32>
    %155 = arith.cmpf ogt, %153, %154 : vector<8x16xf32>
    %cst_81 = arith.constant 2.000000e-01 : f32
    %156 = vector.broadcast %cst_81 : f32 to vector<8x16xf32>
    %157 = arith.mulf %156, %153 : vector<8x16xf32>
    %158 = arith.select %155, %153, %157 : vector<8x16xi1>, vector<8x16xf32>
    %cst_82 = arith.constant dense<0.000000e+00> : vector<24x16xf32>
    %159 = tpu.matmul %89, %158, %cst_82 {dimension_numbers = #tpu.dot_dimension_numbers<[1], [0], [0], [1], [0, 0, 1, 1], [], []>} : vector<24x8xf32>, vector<8x16xf32>, vector<24x16xf32> -> vector<24x16xf32>
    %cst_83 = arith.constant dense<0.000000e+00> : vector<24x16xf32>
    %160 = tpu.matmul %90, %158, %cst_83 {dimension_numbers = #tpu.dot_dimension_numbers<[1], [0], [0], [1], [0, 0, 1, 1], [], []>} : vector<24x8xf32>, vector<8x16xf32>, vector<24x16xf32> -> vector<24x16xf32>
    %c1_84 = arith.constant 1 : index
    %c0_85 = arith.constant 0 : index
    %c0_86 = arith.constant 0 : index
    %161 = vector.load %arg12[%c1_84, %c0_85, %c0_86] : memref<2x1x16xf32, #tpu.memory_space<vmem>>, vector<1x1x16xf32>
    %162 = vector.shape_cast %161 : vector<1x1x16xf32> to vector<1x16xf32>
    %163 = vector.broadcast %162 : vector<1x16xf32> to vector<24x16xf32>
    %164 = arith.mulf %159, %163 : vector<24x16xf32>
    %cst_87 = arith.constant dense<0.000000e+00> : vector<24xf32>
    %165 = vector.multi_reduction <add>, %164, %cst_87 [1] : vector<24x16xf32> to vector<24xf32>
    %166 = vector.shape_cast %165 : vector<24xf32> to vector<24x1xf32>
    %cst_88 = arith.constant 0.000000e+00 : f32
    %167 = vector.broadcast %cst_88 : f32 to vector<24x1xf32>
    %168 = arith.cmpf ogt, %166, %167 : vector<24x1xf32>
    %cst_89 = arith.constant 2.000000e-01 : f32
    %169 = vector.broadcast %cst_89 : f32 to vector<24x1xf32>
    %170 = arith.mulf %169, %166 : vector<24x1xf32>
    %171 = arith.select %168, %166, %170 : vector<24x1xi1>, vector<24x1xf32>
    %cst_90 = arith.constant 2.000000e-03 : f32
    %172 = vector.broadcast %cst_90 : f32 to vector<24x1xf32>
    %173 = arith.mulf %171, %172 : vector<24x1xf32>
    %c1_91 = arith.constant 1 : index
    %c0_92 = arith.constant 0 : index
    %c0_93 = arith.constant 0 : index
    %174 = vector.load %arg13[%c1_91, %c0_92, %c0_93] : memref<2x1x16xf32, #tpu.memory_space<vmem>>, vector<1x1x16xf32>
    %175 = vector.shape_cast %174 : vector<1x1x16xf32> to vector<1x16xf32>
    %176 = vector.broadcast %175 : vector<1x16xf32> to vector<24x16xf32>
    %177 = arith.mulf %160, %176 : vector<24x16xf32>
    %cst_94 = arith.constant dense<0.000000e+00> : vector<24xf32>
    %178 = vector.multi_reduction <add>, %177, %cst_94 [1] : vector<24x16xf32> to vector<24xf32>
    %179 = vector.shape_cast %178 : vector<24xf32> to vector<24x1xf32>
    %cst_95 = arith.constant 0.000000e+00 : f32
    %180 = vector.broadcast %cst_95 : f32 to vector<24x1xf32>
    %181 = arith.cmpf ogt, %179, %180 : vector<24x1xf32>
    %cst_96 = arith.constant 2.000000e-01 : f32
    %182 = vector.broadcast %cst_96 : f32 to vector<24x1xf32>
    %183 = arith.mulf %182, %179 : vector<24x1xf32>
    %184 = arith.select %181, %179, %183 : vector<24x1xi1>, vector<24x1xf32>
    %cst_97 = arith.constant 2.000000e-03 : f32
    %185 = vector.broadcast %cst_97 : f32 to vector<24x1xf32>
    %186 = arith.mulf %184, %185 : vector<24x1xf32>
    %187 = arith.maximumf %173, %186 : vector<24x1xf32>
    %188 = arith.subf %173, %187 : vector<24x1xf32>
    %189 = math.exp %188 : vector<24x1xf32>
    %190 = math.exp %189 : vector<24x1xf32>
    %191 = arith.subf %186, %187 : vector<24x1xf32>
    %192 = math.exp %191 : vector<24x1xf32>
    %193 = math.exp %192 : vector<24x1xf32>
    %194 = arith.addf %190, %193 : vector<24x1xf32>
    %195 = tpu.reciprocal %194 {approx = true} : vector<24x1xf32> -> vector<24x1xf32>
    %196 = arith.mulf %190, %195 : vector<24x1xf32>
    %197 = arith.mulf %193, %195 : vector<24x1xf32>
    %198 = vector.broadcast %196 : vector<24x1xf32> to vector<24x16xf32>
    %199 = arith.mulf %198, %159 : vector<24x16xf32>
    %c0_98 = arith.constant 0 : index
    %c0_99 = arith.constant 0 : index
    %200 = vector.load %arg14[%c0_98, %c0_99] : memref<16x16xf32, #tpu.memory_space<vmem>>, vector<16x16xf32>
    %cst_100 = arith.constant dense<0.000000e+00> : vector<24x16xf32>
    %201 = tpu.matmul %199, %200, %cst_100 {dimension_numbers = #tpu.dot_dimension_numbers<[1], [0], [0], [1], [0, 0, 1, 1], [], []>} : vector<24x16xf32>, vector<16x16xf32>, vector<24x16xf32> -> vector<24x16xf32>
    %202 = vector.broadcast %197 : vector<24x1xf32> to vector<24x16xf32>
    %203 = arith.mulf %202, %160 : vector<24x16xf32>
    %c0_101 = arith.constant 0 : index
    %c0_102 = arith.constant 0 : index
    %204 = vector.load %arg15[%c0_101, %c0_102] : memref<16x16xf32, #tpu.memory_space<vmem>>, vector<16x16xf32>
    %cst_103 = arith.constant dense<0.000000e+00> : vector<24x16xf32>
    %205 = tpu.matmul %203, %204, %cst_103 {dimension_numbers = #tpu.dot_dimension_numbers<[1], [0], [0], [1], [0, 0, 1, 1], [], []>} : vector<24x16xf32>, vector<16x16xf32>, vector<24x16xf32> -> vector<24x16xf32>
    %206 = arith.addf %201, %205 : vector<24x16xf32>
    %c0_104 = arith.constant 0 : index
    %c0_105 = arith.constant 0 : index
    %207 = vector.load %arg16[%c0_104, %c0_105] : memref<1x16xf32, #tpu.memory_space<vmem>>, vector<1x16xf32>
    %208 = vector.broadcast %207 : vector<1x16xf32> to vector<24x16xf32>
    %209 = arith.addf %206, %208 : vector<24x16xf32>
    %210 = tpu.concatenate %137, %196 in 1 : vector<24x1xf32>, vector<24x1xf32> -> vector<24x2xf32>
    %c0_106 = arith.constant 0 : index
    %c0_107 = arith.constant 0 : index
    %211 = vector.load %arg31[%c0_106, %c0_107] : memref<24x2xf32, #tpu.memory_space<vmem>>, vector<24x2xf32>
    tpu.vector_store %arg31[%c0_106, %c0_107], %210 {strides = array<i32>} : memref<24x2xf32, #tpu.memory_space<vmem>>, vector<24x2xf32>,
    %cst_108 = arith.constant dense<0.000000e+00> : vector<16xf32>
    %212 = vector.multi_reduction <add>, %150, %cst_108 [0] : vector<24x16xf32> to vector<16xf32>
    %213 = vector.shape_cast %212 : vector<16xf32> to vector<1x16xf32>
    %cst_109 = arith.constant dense<0.000000e+00> : vector<16xf32>
    %214 = vector.multi_reduction <add>, %209, %cst_109 [0] : vector<24x16xf32> to vector<16xf32>
    %215 = vector.shape_cast %214 : vector<16xf32> to vector<1x16xf32>
    %216 = arith.addf %213, %215 : vector<1x16xf32>
    %cst_110 = arith.constant 0.020833334 : f32
    %217 = vector.broadcast %cst_110 : f32 to vector<1x16xf32>
    %218 = arith.mulf %216, %217 : vector<1x16xf32>
    %219 = vector.broadcast %218 : vector<1x16xf32> to vector<24x16xf32>
    %220 = arith.subf %150, %219 : vector<24x16xf32>
    %221 = vector.broadcast %218 : vector<1x16xf32> to vector<24x16xf32>
    %222 = arith.subf %209, %221 : vector<24x16xf32>
    %223 = arith.mulf %220, %220 : vector<24x16xf32>
    %cst_111 = arith.constant dense<0.000000e+00> : vector<16xf32>
    %224 = vector.multi_reduction <add>, %223, %cst_111 [0] : vector<24x16xf32> to vector<16xf32>
    %225 = vector.shape_cast %224 : vector<16xf32> to vector<1x16xf32>
    %226 = arith.mulf %222, %222 : vector<24x16xf32>
    %cst_112 = arith.constant dense<0.000000e+00> : vector<16xf32>
    %227 = vector.multi_reduction <add>, %226, %cst_112 [0] : vector<24x16xf32> to vector<16xf32>
    %228 = vector.shape_cast %227 : vector<16xf32> to vector<1x16xf32>
    %229 = arith.addf %225, %228 : vector<1x16xf32>
    %cst_113 = arith.constant 0.020833334 : f32
    %230 = vector.broadcast %cst_113 : f32 to vector<1x16xf32>
    %231 = arith.mulf %229, %230 : vector<1x16xf32>
    %cst_114 = arith.constant 9.99999974E-6 : f32
    %232 = vector.broadcast %cst_114 : f32 to vector<1x16xf32>
    %233 = arith.addf %231, %232 : vector<1x16xf32>
    %234 = math.rsqrt %233 : vector<1x16xf32>
    %235 = vector.broadcast %234 : vector<1x16xf32> to vector<24x16xf32>
    %236 = arith.mulf %220, %235 : vector<24x16xf32>
    %237 = vector.broadcast %234 : vector<1x16xf32> to vector<24x16xf32>
    %238 = arith.mulf %222, %237 : vector<24x16xf32>
    %cst_115 = arith.constant 0.000000e+00 : f32
    %239 = vector.broadcast %cst_115 : f32 to vector<24x16xf32>
    %240 = arith.cmpf ogt, %236, %239 : vector<24x16xf32>
    %cst_116 = arith.constant 0.00999999977 : f32
    %241 = vector.broadcast %cst_116 : f32 to vector<24x16xf32>
    %242 = arith.mulf %241, %236 : vector<24x16xf32>
    %243 = arith.select %240, %236, %242 : vector<24x16xi1>, vector<24x16xf32>
    %cst_117 = arith.constant 0.000000e+00 : f32
    %244 = vector.broadcast %cst_117 : f32 to vector<24x16xf32>
    %245 = arith.cmpf ogt, %238, %244 : vector<24x16xf32>
    %cst_118 = arith.constant 0.00999999977 : f32
    %246 = vector.broadcast %cst_118 : f32 to vector<24x16xf32>
    %247 = arith.mulf %246, %238 : vector<24x16xf32>
    %248 = arith.select %245, %238, %247 : vector<24x16xi1>, vector<24x16xf32>
    %c0_119 = arith.constant 0 : index
    %c0_120 = arith.constant 0 : index
    %249 = vector.load %arg17[%c0_119, %c0_120] : memref<16x16xf32, #tpu.memory_space<vmem>>, vector<16x16xf32>
    %cst_121 = arith.constant dense<0.000000e+00> : vector<24x16xf32>
    %250 = tpu.matmul %243, %249, %cst_121 {dimension_numbers = #tpu.dot_dimension_numbers<[1], [0], [0], [1], [0, 0, 1, 1], [], []>} : vector<24x16xf32>, vector<16x16xf32>, vector<24x16xf32> -> vector<24x16xf32>
    %c0_122 = arith.constant 0 : index
    %c0_123 = arith.constant 0 : index
    %251 = vector.load %arg18[%c0_122, %c0_123] : memref<1x16xf32, #tpu.memory_space<vmem>>, vector<1x16xf32>
    %252 = vector.broadcast %251 : vector<1x16xf32> to vector<24x16xf32>
    %253 = arith.addf %250, %252 : vector<24x16xf32>
    %c0_124 = arith.constant 0 : index
    %c0_125 = arith.constant 0 : index
    %254 = vector.load %arg17[%c0_124, %c0_125] : memref<16x16xf32, #tpu.memory_space<vmem>>, vector<16x16xf32>
    %cst_126 = arith.constant dense<0.000000e+00> : vector<24x16xf32>
    %255 = tpu.matmul %248, %254, %cst_126 {dimension_numbers = #tpu.dot_dimension_numbers<[1], [0], [0], [1], [0, 0, 1, 1], [], []>} : vector<24x16xf32>, vector<16x16xf32>, vector<24x16xf32> -> vector<24x16xf32>
    %c0_127 = arith.constant 0 : index
    %c0_128 = arith.constant 0 : index
    %256 = vector.load %arg18[%c0_127, %c0_128] : memref<1x16xf32, #tpu.memory_space<vmem>>, vector<1x16xf32>
    %257 = vector.broadcast %256 : vector<1x16xf32> to vector<24x16xf32>
    %258 = arith.addf %255, %257 : vector<24x16xf32>
    %cst_129 = arith.constant dense<0.000000e+00> : vector<16xf32>
    %259 = vector.multi_reduction <add>, %253, %cst_129 [0] : vector<24x16xf32> to vector<16xf32>
    %260 = vector.shape_cast %259 : vector<16xf32> to vector<1x16xf32>
    %cst_130 = arith.constant dense<0.000000e+00> : vector<16xf32>
    %261 = vector.multi_reduction <add>, %258, %cst_130 [0] : vector<24x16xf32> to vector<16xf32>
    %262 = vector.shape_cast %261 : vector<16xf32> to vector<1x16xf32>
    %263 = arith.addf %260, %262 : vector<1x16xf32>
    %cst_131 = arith.constant 0.020833334 : f32
    %264 = vector.broadcast %cst_131 : f32 to vector<1x16xf32>
    %265 = arith.mulf %263, %264 : vector<1x16xf32>
    %266 = vector.broadcast %265 : vector<1x16xf32> to vector<24x16xf32>
    %267 = arith.subf %253, %266 : vector<24x16xf32>
    %268 = vector.broadcast %265 : vector<1x16xf32> to vector<24x16xf32>
    %269 = arith.subf %258, %268 : vector<24x16xf32>
    %270 = arith.mulf %267, %267 : vector<24x16xf32>
    %cst_132 = arith.constant dense<0.000000e+00> : vector<16xf32>
    %271 = vector.multi_reduction <add>, %270, %cst_132 [0] : vector<24x16xf32> to vector<16xf32>
    %272 = vector.shape_cast %271 : vector<16xf32> to vector<1x16xf32>
    %273 = arith.mulf %269, %269 : vector<24x16xf32>
    %cst_133 = arith.constant dense<0.000000e+00> : vector<16xf32>
    %274 = vector.multi_reduction <add>, %273, %cst_133 [0] : vector<24x16xf32> to vector<16xf32>
    %275 = vector.shape_cast %274 : vector<16xf32> to vector<1x16xf32>
    %276 = arith.addf %272, %275 : vector<1x16xf32>
    %cst_134 = arith.constant 0.020833334 : f32
    %277 = vector.broadcast %cst_134 : f32 to vector<1x16xf32>
    %278 = arith.mulf %276, %277 : vector<1x16xf32>
    %cst_135 = arith.constant 9.99999974E-6 : f32
    %279 = vector.broadcast %cst_135 : f32 to vector<1x16xf32>
    %280 = arith.addf %278, %279 : vector<1x16xf32>
    %281 = math.rsqrt %280 : vector<1x16xf32>
    %282 = vector.broadcast %281 : vector<1x16xf32> to vector<24x16xf32>
    %283 = arith.mulf %267, %282 : vector<24x16xf32>
    %284 = vector.broadcast %281 : vector<1x16xf32> to vector<24x16xf32>
    %285 = arith.mulf %269, %284 : vector<24x16xf32>
    %cst_136 = arith.constant 0.000000e+00 : f32
    %286 = vector.broadcast %cst_136 : f32 to vector<24x16xf32>
    %287 = arith.cmpf ogt, %283, %286 : vector<24x16xf32>
    %cst_137 = arith.constant 2.000000e-01 : f32
    %288 = vector.broadcast %cst_137 : f32 to vector<24x16xf32>
    %289 = arith.mulf %288, %283 : vector<24x16xf32>
    %290 = arith.select %287, %283, %289 : vector<24x16xi1>, vector<24x16xf32>
    %cst_138 = arith.constant 0.000000e+00 : f32
    %291 = vector.broadcast %cst_138 : f32 to vector<24x16xf32>
    %292 = arith.cmpf ogt, %285, %291 : vector<24x16xf32>
    %cst_139 = arith.constant 2.000000e-01 : f32
    %293 = vector.broadcast %cst_139 : f32 to vector<24x16xf32>
    %294 = arith.mulf %293, %285 : vector<24x16xf32>
    %295 = arith.select %292, %285, %294 : vector<24x16xi1>, vector<24x16xf32>
    %296 = vector.broadcast %137 : vector<24x1xf32> to vector<24x16xf32>
    %297 = arith.mulf %290, %296 : vector<24x16xf32>
    %cst_140 = arith.constant dense<0.000000e+00> : vector<8x16xf32>
    %298 = tpu.matmul %91, %297, %cst_140 {dimension_numbers = #tpu.dot_dimension_numbers<[1], [0], [0], [1], [0, 0, 1, 1], [], []>} : vector<8x24xf32>, vector<24x16xf32>, vector<8x16xf32> -> vector<8x16xf32>
    %c0_141 = arith.constant 0 : index
    %c0_142 = arith.constant 0 : index
    %299 = vector.load %arg19[%c0_141, %c0_142] : memref<16x16xf32, #tpu.memory_space<vmem>>, vector<16x16xf32>
    %cst_143 = arith.constant dense<0.000000e+00> : vector<8x16xf32>
    %300 = tpu.matmul %298, %299, %cst_143 {dimension_numbers = #tpu.dot_dimension_numbers<[1], [0], [0], [1], [0, 0, 1, 1], [], []>} : vector<8x16xf32>, vector<16x16xf32>, vector<8x16xf32> -> vector<8x16xf32>
    %c0_144 = arith.constant 0 : index
    %c0_145 = arith.constant 0 : index
    %301 = vector.load %arg20[%c0_144, %c0_145] : memref<1x16xf32, #tpu.memory_space<vmem>>, vector<1x16xf32>
    %302 = vector.broadcast %301 : vector<1x16xf32> to vector<8x16xf32>
    %303 = arith.addf %300, %302 : vector<8x16xf32>
    %304 = vector.broadcast %196 : vector<24x1xf32> to vector<24x16xf32>
    %305 = arith.mulf %295, %304 : vector<24x16xf32>
    %cst_146 = arith.constant dense<0.000000e+00> : vector<8x16xf32>
    %306 = tpu.matmul %91, %305, %cst_146 {dimension_numbers = #tpu.dot_dimension_numbers<[1], [0], [0], [1], [0, 0, 1, 1], [], []>} : vector<8x24xf32>, vector<24x16xf32>, vector<8x16xf32> -> vector<8x16xf32>
    %c0_147 = arith.constant 0 : index
    %c0_148 = arith.constant 0 : index
    %307 = vector.load %arg19[%c0_147, %c0_148] : memref<16x16xf32, #tpu.memory_space<vmem>>, vector<16x16xf32>
    %cst_149 = arith.constant dense<0.000000e+00> : vector<8x16xf32>
    %308 = tpu.matmul %306, %307, %cst_149 {dimension_numbers = #tpu.dot_dimension_numbers<[1], [0], [0], [1], [0, 0, 1, 1], [], []>} : vector<8x16xf32>, vector<16x16xf32>, vector<8x16xf32> -> vector<8x16xf32>
    %c0_150 = arith.constant 0 : index
    %c0_151 = arith.constant 0 : index
    %309 = vector.load %arg20[%c0_150, %c0_151] : memref<1x16xf32, #tpu.memory_space<vmem>>, vector<1x16xf32>
    %310 = vector.broadcast %309 : vector<1x16xf32> to vector<8x16xf32>
    %311 = arith.addf %308, %310 : vector<8x16xf32>
    %cst_152 = arith.constant dense<0.000000e+00> : vector<16xf32>
    %312 = vector.multi_reduction <add>, %303, %cst_152 [0] : vector<8x16xf32> to vector<16xf32>
    %313 = vector.shape_cast %312 : vector<16xf32> to vector<1x16xf32>
    %cst_153 = arith.constant dense<0.000000e+00> : vector<16xf32>
    %314 = vector.multi_reduction <add>, %311, %cst_153 [0] : vector<8x16xf32> to vector<16xf32>
    %315 = vector.shape_cast %314 : vector<16xf32> to vector<1x16xf32>
    %316 = arith.addf %313, %315 : vector<1x16xf32>
    %cst_154 = arith.constant 6.250000e-02 : f32
    %317 = vector.broadcast %cst_154 : f32 to vector<1x16xf32>
    %318 = arith.mulf %316, %317 : vector<1x16xf32>
    %319 = vector.broadcast %318 : vector<1x16xf32> to vector<8x16xf32>
    %320 = arith.subf %303, %319 : vector<8x16xf32>
    %321 = vector.broadcast %318 : vector<1x16xf32> to vector<8x16xf32>
    %322 = arith.subf %311, %321 : vector<8x16xf32>
    %323 = arith.mulf %320, %320 : vector<8x16xf32>
    %cst_155 = arith.constant dense<0.000000e+00> : vector<16xf32>
    %324 = vector.multi_reduction <add>, %323, %cst_155 [0] : vector<8x16xf32> to vector<16xf32>
    %325 = vector.shape_cast %324 : vector<16xf32> to vector<1x16xf32>
    %326 = arith.mulf %322, %322 : vector<8x16xf32>
    %cst_156 = arith.constant dense<0.000000e+00> : vector<16xf32>
    %327 = vector.multi_reduction <add>, %326, %cst_156 [0] : vector<8x16xf32> to vector<16xf32>
    %328 = vector.shape_cast %327 : vector<16xf32> to vector<1x16xf32>
    %329 = arith.addf %325, %328 : vector<1x16xf32>
    %cst_157 = arith.constant 6.250000e-02 : f32
    %330 = vector.broadcast %cst_157 : f32 to vector<1x16xf32>
    %331 = arith.mulf %329, %330 : vector<1x16xf32>
    %cst_158 = arith.constant 9.99999974E-6 : f32
    %332 = vector.broadcast %cst_158 : f32 to vector<1x16xf32>
    %333 = arith.addf %331, %332 : vector<1x16xf32>
    %334 = math.rsqrt %333 : vector<1x16xf32>
    %335 = vector.broadcast %334 : vector<1x16xf32> to vector<8x16xf32>
    %336 = arith.mulf %320, %335 : vector<8x16xf32>
    %337 = vector.broadcast %334 : vector<1x16xf32> to vector<8x16xf32>
    %338 = arith.mulf %322, %337 : vector<8x16xf32>
    %cst_159 = arith.constant 0.000000e+00 : f32
    %339 = vector.broadcast %cst_159 : f32 to vector<8x16xf32>
    %340 = arith.cmpf ogt, %336, %339 : vector<8x16xf32>
    %cst_160 = arith.constant 0.00999999977 : f32
    %341 = vector.broadcast %cst_160 : f32 to vector<8x16xf32>
    %342 = arith.mulf %341, %336 : vector<8x16xf32>
    %343 = arith.select %340, %336, %342 : vector<8x16xi1>, vector<8x16xf32>
    %cst_161 = arith.constant 0.000000e+00 : f32
    %344 = vector.broadcast %cst_161 : f32 to vector<8x16xf32>
    %345 = arith.cmpf ogt, %338, %344 : vector<8x16xf32>
    %cst_162 = arith.constant 0.00999999977 : f32
    %346 = vector.broadcast %cst_162 : f32 to vector<8x16xf32>
    %347 = arith.mulf %346, %338 : vector<8x16xf32>
    %348 = arith.select %345, %338, %347 : vector<8x16xi1>, vector<8x16xf32>
    %c0_163 = arith.constant 0 : index
    %c0_164 = arith.constant 0 : index
    %349 = vector.load %arg21[%c0_163, %c0_164] : memref<16x16xf32, #tpu.memory_space<vmem>>, vector<16x16xf32>
    %cst_165 = arith.constant dense<0.000000e+00> : vector<8x16xf32>
    %350 = tpu.matmul %343, %349, %cst_165 {dimension_numbers = #tpu.dot_dimension_numbers<[1], [0], [0], [1], [0, 0, 1, 1], [], []>} : vector<8x16xf32>, vector<16x16xf32>, vector<8x16xf32> -> vector<8x16xf32>
    %c0_166 = arith.constant 0 : index
    %c0_167 = arith.constant 0 : index
    %351 = vector.load %arg22[%c0_166, %c0_167] : memref<1x16xf32, #tpu.memory_space<vmem>>, vector<1x16xf32>
    %352 = vector.broadcast %351 : vector<1x16xf32> to vector<8x16xf32>
    %353 = arith.addf %350, %352 : vector<8x16xf32>
    %c0_168 = arith.constant 0 : index
    %c0_169 = arith.constant 0 : index
    %354 = vector.load %arg21[%c0_168, %c0_169] : memref<16x16xf32, #tpu.memory_space<vmem>>, vector<16x16xf32>
    %cst_170 = arith.constant dense<0.000000e+00> : vector<8x16xf32>
    %355 = tpu.matmul %348, %354, %cst_170 {dimension_numbers = #tpu.dot_dimension_numbers<[1], [0], [0], [1], [0, 0, 1, 1], [], []>} : vector<8x16xf32>, vector<16x16xf32>, vector<8x16xf32> -> vector<8x16xf32>
    %c0_171 = arith.constant 0 : index
    %c0_172 = arith.constant 0 : index
    %356 = vector.load %arg22[%c0_171, %c0_172] : memref<1x16xf32, #tpu.memory_space<vmem>>, vector<1x16xf32>
    %357 = vector.broadcast %356 : vector<1x16xf32> to vector<8x16xf32>
    %358 = arith.addf %355, %357 : vector<8x16xf32>
    %cst_173 = arith.constant dense<0.000000e+00> : vector<16xf32>
    %359 = vector.multi_reduction <add>, %353, %cst_173 [0] : vector<8x16xf32> to vector<16xf32>
    %360 = vector.shape_cast %359 : vector<16xf32> to vector<1x16xf32>
    %cst_174 = arith.constant dense<0.000000e+00> : vector<16xf32>
    %361 = vector.multi_reduction <add>, %358, %cst_174 [0] : vector<8x16xf32> to vector<16xf32>
    %362 = vector.shape_cast %361 : vector<16xf32> to vector<1x16xf32>
    %363 = arith.addf %360, %362 : vector<1x16xf32>
    %cst_175 = arith.constant 6.250000e-02 : f32
    %364 = vector.broadcast %cst_175 : f32 to vector<1x16xf32>
    %365 = arith.mulf %363, %364 : vector<1x16xf32>
    %366 = vector.broadcast %365 : vector<1x16xf32> to vector<8x16xf32>
    %367 = arith.subf %353, %366 : vector<8x16xf32>
    %368 = vector.broadcast %365 : vector<1x16xf32> to vector<8x16xf32>
    %369 = arith.subf %358, %368 : vector<8x16xf32>
    %370 = arith.mulf %367, %367 : vector<8x16xf32>
    %cst_176 = arith.constant dense<0.000000e+00> : vector<16xf32>
    %371 = vector.multi_reduction <add>, %370, %cst_176 [0] : vector<8x16xf32> to vector<16xf32>
    %372 = vector.shape_cast %371 : vector<16xf32> to vector<1x16xf32>
    %373 = arith.mulf %369, %369 : vector<8x16xf32>
    %cst_177 = arith.constant dense<0.000000e+00> : vector<16xf32>
    %374 = vector.multi_reduction <add>, %373, %cst_177 [0] : vector<8x16xf32> to vector<16xf32>
    %375 = vector.shape_cast %374 : vector<16xf32> to vector<1x16xf32>
    %376 = arith.addf %372, %375 : vector<1x16xf32>
    %cst_178 = arith.constant 6.250000e-02 : f32
    %377 = vector.broadcast %cst_178 : f32 to vector<1x16xf32>
    %378 = arith.mulf %376, %377 : vector<1x16xf32>
    %cst_179 = arith.constant 9.99999974E-6 : f32
    %379 = vector.broadcast %cst_179 : f32 to vector<1x16xf32>
    %380 = arith.addf %378, %379 : vector<1x16xf32>
    %381 = math.rsqrt %380 : vector<1x16xf32>
    %382 = vector.broadcast %381 : vector<1x16xf32> to vector<8x16xf32>
    %383 = arith.mulf %367, %382 : vector<8x16xf32>
    %384 = vector.broadcast %381 : vector<1x16xf32> to vector<8x16xf32>
    %385 = arith.mulf %369, %384 : vector<8x16xf32>
    %cst_180 = arith.constant 0.000000e+00 : f32
    %386 = vector.broadcast %cst_180 : f32 to vector<8x16xf32>
    %387 = arith.cmpf ogt, %383, %386 : vector<8x16xf32>
    %cst_181 = arith.constant 2.000000e-01 : f32
    %388 = vector.broadcast %cst_181 : f32 to vector<8x16xf32>
    %389 = arith.mulf %388, %383 : vector<8x16xf32>
    %390 = arith.select %387, %383, %389 : vector<8x16xi1>, vector<8x16xf32>
    %cst_182 = arith.constant 0.000000e+00 : f32
    %391 = vector.broadcast %cst_182 : f32 to vector<8x16xf32>
    %392 = arith.cmpf ogt, %385, %391 : vector<8x16xf32>
    %cst_183 = arith.constant 2.000000e-01 : f32
    %393 = vector.broadcast %cst_183 : f32 to vector<8x16xf32>
    %394 = arith.mulf %393, %385 : vector<8x16xf32>
    %395 = arith.select %392, %385, %394 : vector<8x16xi1>, vector<8x16xf32>
    %c0_184 = arith.constant 0 : index
    %c0_185 = arith.constant 0 : index
    %396 = vector.load %arg24[%c0_184, %c0_185] : memref<1x16xf32, #tpu.memory_space<vmem>>, vector<1x16xf32>
    %c0_186 = arith.constant 0 : index
    %c0_187 = arith.constant 0 : index
    %c0_188 = arith.constant 0 : index
    %397 = vector.load %arg23[%c0_186, %c0_187, %c0_188] : memref<2x16x16xf32, #tpu.memory_space<vmem>>, vector<1x16x16xf32>
    %398 = vector.shape_cast %397 : vector<1x16x16xf32> to vector<16x16xf32>
    %cst_189 = arith.constant dense<0.000000e+00> : vector<8x16xf32>
    %399 = tpu.matmul %390, %398, %cst_189 {dimension_numbers = #tpu.dot_dimension_numbers<[1], [0], [0], [1], [0, 0, 1, 1], [], []>} : vector<8x16xf32>, vector<16x16xf32>, vector<8x16xf32> -> vector<8x16xf32>
    %400 = vector.broadcast %396 : vector<1x16xf32> to vector<8x16xf32>
    %401 = arith.addf %400, %399 : vector<8x16xf32>
    %c1_190 = arith.constant 1 : index
    %c0_191 = arith.constant 0 : index
    %c0_192 = arith.constant 0 : index
    %402 = vector.load %arg23[%c1_190, %c0_191, %c0_192] : memref<2x16x16xf32, #tpu.memory_space<vmem>>, vector<1x16x16xf32>
    %403 = vector.shape_cast %402 : vector<1x16x16xf32> to vector<16x16xf32>
    %cst_193 = arith.constant dense<0.000000e+00> : vector<8x16xf32>
    %404 = tpu.matmul %395, %403, %cst_193 {dimension_numbers = #tpu.dot_dimension_numbers<[1], [0], [0], [1], [0, 0, 1, 1], [], []>} : vector<8x16xf32>, vector<16x16xf32>, vector<8x16xf32> -> vector<8x16xf32>
    %405 = arith.addf %401, %404 : vector<8x16xf32>
    %cst_194 = arith.constant dense<0.000000e+00> : vector<16xf32>
    %406 = vector.multi_reduction <add>, %405, %cst_194 [0] : vector<8x16xf32> to vector<16xf32>
    %407 = vector.shape_cast %406 : vector<16xf32> to vector<1x16xf32>
    %cst_195 = arith.constant 8.000000e+00 : f32
    %408 = vector.broadcast %cst_195 : f32 to vector<1x16xf32>
    %409 = arith.divf %407, %408 : vector<1x16xf32>
    %410 = vector.broadcast %409 : vector<1x16xf32> to vector<8x16xf32>
    %411 = arith.subf %405, %410 : vector<8x16xf32>
    %412 = arith.mulf %411, %411 : vector<8x16xf32>
    %cst_196 = arith.constant dense<0.000000e+00> : vector<16xf32>
    %413 = vector.multi_reduction <add>, %412, %cst_196 [0] : vector<8x16xf32> to vector<16xf32>
    %414 = vector.shape_cast %413 : vector<16xf32> to vector<1x16xf32>
    %cst_197 = arith.constant 8.000000e+00 : f32
    %415 = vector.broadcast %cst_197 : f32 to vector<1x16xf32>
    %416 = arith.divf %414, %415 : vector<1x16xf32>
    %cst_198 = arith.constant 9.99999974E-6 : f32
    %417 = vector.broadcast %cst_198 : f32 to vector<1x16xf32>
    %418 = arith.addf %416, %417 : vector<1x16xf32>
    %419 = math.rsqrt %418 : vector<1x16xf32>
    %420 = vector.broadcast %419 : vector<1x16xf32> to vector<8x16xf32>
    %421 = arith.mulf %411, %420 : vector<8x16xf32>
    %cst_199 = arith.constant 0.000000e+00 : f32
    %422 = vector.broadcast %cst_199 : f32 to vector<8x16xf32>
    %423 = arith.cmpf ogt, %421, %422 : vector<8x16xf32>
    %cst_200 = arith.constant 0.000000e+00 : f32
    %424 = vector.broadcast %cst_200 : f32 to vector<8x16xf32>
    %425 = arith.minimumf %421, %424 : vector<8x16xf32>
    %426 = math.exp %425 : vector<8x16xf32>
    %cst_201 = arith.constant 1.000000e+00 : f32
    %427 = vector.broadcast %cst_201 : f32 to vector<8x16xf32>
    %428 = arith.subf %426, %427 : vector<8x16xf32>
    %429 = arith.select %423, %421, %428 : vector<8x16xi1>, vector<8x16xf32>
    %c0_202 = arith.constant 0 : index
    %c0_203 = arith.constant 0 : index
    %430 = vector.load %arg25[%c0_202, %c0_203] : memref<16x16xf32, #tpu.memory_space<vmem>>, vector<16x16xf32>
    %cst_204 = arith.constant dense<0.000000e+00> : vector<8x16xf32>
    %431 = tpu.matmul %429, %430, %cst_204 {dimension_numbers = #tpu.dot_dimension_numbers<[1], [0], [0], [1], [0, 0, 1, 1], [], []>} : vector<8x16xf32>, vector<16x16xf32>, vector<8x16xf32> -> vector<8x16xf32>
    %c0_205 = arith.constant 0 : index
    %c0_206 = arith.constant 0 : index
    %432 = vector.load %arg26[%c0_205, %c0_206] : memref<1x16xf32, #tpu.memory_space<vmem>>, vector<1x16xf32>
    %433 = vector.broadcast %432 : vector<1x16xf32> to vector<8x16xf32>
    %434 = arith.addf %431, %433 : vector<8x16xf32>
    %cst_207 = arith.constant dense<0.000000e+00> : vector<16xf32>
    %435 = vector.multi_reduction <add>, %434, %cst_207 [0] : vector<8x16xf32> to vector<16xf32>
    %436 = vector.shape_cast %435 : vector<16xf32> to vector<1x16xf32>
    %cst_208 = arith.constant 8.000000e+00 : f32
    %437 = vector.broadcast %cst_208 : f32 to vector<1x16xf32>
    %438 = arith.divf %436, %437 : vector<1x16xf32>
    %439 = vector.broadcast %438 : vector<1x16xf32> to vector<8x16xf32>
    %440 = arith.subf %434, %439 : vector<8x16xf32>
    %441 = arith.mulf %440, %440 : vector<8x16xf32>
    %cst_209 = arith.constant dense<0.000000e+00> : vector<16xf32>
    %442 = vector.multi_reduction <add>, %441, %cst_209 [0] : vector<8x16xf32> to vector<16xf32>
    %443 = vector.shape_cast %442 : vector<16xf32> to vector<1x16xf32>
    %cst_210 = arith.constant 8.000000e+00 : f32
    %444 = vector.broadcast %cst_210 : f32 to vector<1x16xf32>
    %445 = arith.divf %443, %444 : vector<1x16xf32>
    %cst_211 = arith.constant 9.99999974E-6 : f32
    %446 = vector.broadcast %cst_211 : f32 to vector<1x16xf32>
    %447 = arith.addf %445, %446 : vector<1x16xf32>
    %448 = math.rsqrt %447 : vector<1x16xf32>
    %449 = vector.broadcast %448 : vector<1x16xf32> to vector<8x16xf32>
    %450 = arith.mulf %440, %449 : vector<8x16xf32>
    %cst_212 = arith.constant 0.000000e+00 : f32
    %451 = vector.broadcast %cst_212 : f32 to vector<8x16xf32>
    %452 = arith.cmpf ogt, %450, %451 : vector<8x16xf32>
    %cst_213 = arith.constant 0.000000e+00 : f32
    %453 = vector.broadcast %cst_213 : f32 to vector<8x16xf32>
    %454 = arith.minimumf %450, %453 : vector<8x16xf32>
    %455 = math.exp %454 : vector<8x16xf32>
    %cst_214 = arith.constant 1.000000e+00 : f32
    %456 = vector.broadcast %cst_214 : f32 to vector<8x16xf32>
    %457 = arith.subf %455, %456 : vector<8x16xf32>
    %458 = arith.select %452, %450, %457 : vector<8x16xi1>, vector<8x16xf32>
    %c0_215 = arith.constant 0 : index
    %c0_216 = arith.constant 0 : index
    %459 = vector.load %arg27[%c0_215, %c0_216] : memref<16x8xf32, #tpu.memory_space<vmem>>, vector<16x8xf32>
    %cst_217 = arith.constant dense<0.000000e+00> : vector<8x8xf32>
    %460 = tpu.matmul %458, %459, %cst_217 {dimension_numbers = #tpu.dot_dimension_numbers<[1], [0], [0], [1], [0, 0, 1, 1], [], []>} : vector<8x16xf32>, vector<16x8xf32>, vector<8x8xf32> -> vector<8x8xf32>
    %c0_218 = arith.constant 0 : index
    %c0_219 = arith.constant 0 : index
    %461 = vector.load %arg28[%c0_218, %c0_219] : memref<1x8xf32, #tpu.memory_space<vmem>>, vector<1x8xf32>
    %462 = vector.broadcast %461 : vector<1x8xf32> to vector<8x8xf32>
    %463 = arith.addf %460, %462 : vector<8x8xf32>
    %cst_220 = arith.constant dense<0.000000e+00> : vector<8xf32>
    %464 = vector.multi_reduction <add>, %463, %cst_220 [0] : vector<8x8xf32> to vector<8xf32>
    %465 = vector.shape_cast %464 : vector<8xf32> to vector<1x8xf32>
    %cst_221 = arith.constant 8.000000e+00 : f32
    %466 = vector.broadcast %cst_221 : f32 to vector<1x8xf32>
    %467 = arith.divf %465, %466 : vector<1x8xf32>
    %468 = vector.broadcast %467 : vector<1x8xf32> to vector<8x8xf32>
    %469 = arith.subf %463, %468 : vector<8x8xf32>
    %470 = arith.mulf %469, %469 : vector<8x8xf32>
    %cst_222 = arith.constant dense<0.000000e+00> : vector<8xf32>
    %471 = vector.multi_reduction <add>, %470, %cst_222 [0] : vector<8x8xf32> to vector<8xf32>
    %472 = vector.shape_cast %471 : vector<8xf32> to vector<1x8xf32>
    %cst_223 = arith.constant 8.000000e+00 : f32
    %473 = vector.broadcast %cst_223 : f32 to vector<1x8xf32>
    %474 = arith.divf %472, %473 : vector<1x8xf32>
    %cst_224 = arith.constant 9.99999974E-6 : f32
    %475 = vector.broadcast %cst_224 : f32 to vector<1x8xf32>
    %476 = arith.addf %474, %475 : vector<1x8xf32>
    %477 = math.rsqrt %476 : vector<1x8xf32>
    %478 = vector.broadcast %477 : vector<1x8xf32> to vector<8x8xf32>
    %479 = arith.mulf %469, %478 : vector<8x8xf32>
    %cst_225 = arith.constant 0.000000e+00 : f32
    %480 = vector.broadcast %cst_225 : f32 to vector<8x8xf32>
    %481 = arith.cmpf ogt, %479, %480 : vector<8x8xf32>
    %cst_226 = arith.constant 0.000000e+00 : f32
    %482 = vector.broadcast %cst_226 : f32 to vector<8x8xf32>
    %483 = arith.minimumf %479, %482 : vector<8x8xf32>
    %484 = math.exp %483 : vector<8x8xf32>
    %cst_227 = arith.constant 1.000000e+00 : f32
    %485 = vector.broadcast %cst_227 : f32 to vector<8x8xf32>
    %486 = arith.subf %484, %485 : vector<8x8xf32>
    %487 = arith.select %481, %479, %486 : vector<8x8xi1>, vector<8x8xf32>
    %c0_228 = arith.constant 0 : index
    %c0_229 = arith.constant 0 : index
    %488 = vector.load %arg29[%c0_228, %c0_229] : memref<8x8xf32, #tpu.memory_space<vmem>>, vector<8x8xf32>
    tpu.vector_store %arg29[%c0_228, %c0_229], %487 {strides = array<i32>} : memref<8x8xf32, #tpu.memory_space<vmem>>, vector<8x8xf32>,
    return
  }
  func.func @transform_0(%arg0: i32) -> (i32, i32) {
    %c0_i32 = arith.constant 0 : i32
    %c0_i32_0 = arith.constant 0 : i32
    %c0_i32_1 = arith.constant 0 : i32
    return %c0_i32, %c0_i32_0 : i32, i32
  }
  func.func @transform_1(%arg0: i32) -> (i32, i32) {
    %c0_i32 = arith.constant 0 : i32
    %c0_i32_0 = arith.constant 0 : i32
    %c0_i32_1 = arith.constant 0 : i32
    return %c0_i32, %c0_i32_0 : i32, i32
  }
  func.func @transform_2(%arg0: i32) -> (i32, i32) {
    %c0_i32 = arith.constant 0 : i32
    %c0_i32_0 = arith.constant 0 : i32
    %c0_i32_1 = arith.constant 0 : i32
    return %c0_i32, %c0_i32_0 : i32, i32
  }
  func.func @transform_3(%arg0: i32) -> (i32, i32) {
    %c0_i32 = arith.constant 0 : i32
    %c0_i32_0 = arith.constant 0 : i32
    %c0_i32_1 = arith.constant 0 : i32
    return %c0_i32, %c0_i32_0 : i32, i32
  }
  func.func @transform_4(%arg0: i32) -> (i32, i32) {
    %c0_i32 = arith.constant 0 : i32
    %c0_i32_0 = arith.constant 0 : i32
    %c0_i32_1 = arith.constant 0 : i32
    return %c0_i32, %c0_i32_0 : i32, i32
  }
  func.func @transform_5(%arg0: i32) -> (i32, i32) {
    %c0_i32 = arith.constant 0 : i32
    %c0_i32_0 = arith.constant 0 : i32
    %c0_i32_1 = arith.constant 0 : i32
    return %c0_i32, %c0_i32_0 : i32, i32
  }
  func.func @transform_6(%arg0: i32) -> (i32, i32) {
    %c0_i32 = arith.constant 0 : i32
    %c0_i32_0 = arith.constant 0 : i32
    %c0_i32_1 = arith.constant 0 : i32
    return %c0_i32, %c0_i32_0 : i32, i32
  }
  func.func @transform_7(%arg0: i32) -> (i32, i32) {
    %c0_i32 = arith.constant 0 : i32
    %c0_i32_0 = arith.constant 0 : i32
    %c0_i32_1 = arith.constant 0 : i32
    return %c0_i32, %c0_i32_0 : i32, i32
  }
  func.func @transform_8(%arg0: i32) -> (i32, i32) {
    %c0_i32 = arith.constant 0 : i32
    %c0_i32_0 = arith.constant 0 : i32
    %c0_i32_1 = arith.constant 0 : i32
    return %c0_i32, %c0_i32_0 : i32, i32
  }
  func.func @transform_9(%arg0: i32) -> (i32, i32) {
    %c0_i32 = arith.constant 0 : i32
    %c0_i32_0 = arith.constant 0 : i32
    %c0_i32_1 = arith.constant 0 : i32
    return %c0_i32, %c0_i32_0 : i32, i32
  }
  func.func @transform_10(%arg0: i32) -> (i32, i32, i32) {
    %c0_i32 = arith.constant 0 : i32
    %c0_i32_0 = arith.constant 0 : i32
    %c0_i32_1 = arith.constant 0 : i32
    %c0_i32_2 = arith.constant 0 : i32
    return %c0_i32, %c0_i32_0, %c0_i32_1 : i32, i32, i32
  }
  func.func @transform_11(%arg0: i32) -> (i32, i32, i32) {
    %c0_i32 = arith.constant 0 : i32
    %c0_i32_0 = arith.constant 0 : i32
    %c0_i32_1 = arith.constant 0 : i32
    %c0_i32_2 = arith.constant 0 : i32
    return %c0_i32, %c0_i32_0, %c0_i32_1 : i32, i32, i32
  }
  func.func @transform_12(%arg0: i32) -> (i32, i32, i32) {
    %c0_i32 = arith.constant 0 : i32
    %c0_i32_0 = arith.constant 0 : i32
    %c0_i32_1 = arith.constant 0 : i32
    %c0_i32_2 = arith.constant 0 : i32
    return %c0_i32, %c0_i32_0, %c0_i32_1 : i32, i32, i32
  }
  func.func @transform_13(%arg0: i32) -> (i32, i32) {
    %c0_i32 = arith.constant 0 : i32
    %c0_i32_0 = arith.constant 0 : i32
    %c0_i32_1 = arith.constant 0 : i32
    return %c0_i32, %c0_i32_0 : i32, i32
  }
  func.func @transform_14(%arg0: i32) -> (i32, i32) {
    %c0_i32 = arith.constant 0 : i32
    %c0_i32_0 = arith.constant 0 : i32
    %c0_i32_1 = arith.constant 0 : i32
    return %c0_i32, %c0_i32_0 : i32, i32
  }
  func.func @transform_15(%arg0: i32) -> (i32, i32) {
    %c0_i32 = arith.constant 0 : i32
    %c0_i32_0 = arith.constant 0 : i32
    %c0_i32_1 = arith.constant 0 : i32
    return %c0_i32, %c0_i32_0 : i32, i32
  }
  func.func @transform_16(%arg0: i32) -> (i32, i32) {
    %c0_i32 = arith.constant 0 : i32
    %c0_i32_0 = arith.constant 0 : i32
    %c0_i32_1 = arith.constant 0 : i32
    return %c0_i32, %c0_i32_0 : i32, i32
  }
  func.func @transform_17(%arg0: i32) -> (i32, i32) {
    %c0_i32 = arith.constant 0 : i32
    %c0_i32_0 = arith.constant 0 : i32
    %c0_i32_1 = arith.constant 0 : i32
    return %c0_i32, %c0_i32_0 : i32, i32
  }
  func.func @transform_18(%arg0: i32) -> (i32, i32) {
    %c0_i32 = arith.constant 0 : i32
    %c0_i32_0 = arith.constant 0 : i32
    %c0_i32_1 = arith.constant 0 : i32
    return %c0_i32, %c0_i32_0 : i32, i32
  }
  func.func @transform_19(%arg0: i32) -> (i32, i32) {
    %c0_i32 = arith.constant 0 : i32
    %c0_i32_0 = arith.constant 0 : i32
    %c0_i32_1 = arith.constant 0 : i32
    return %c0_i32, %c0_i32_0 : i32, i32
  }
  func.func @transform_20(%arg0: i32) -> (i32, i32) {
    %c0_i32 = arith.constant 0 : i32
    %c0_i32_0 = arith.constant 0 : i32
    %c0_i32_1 = arith.constant 0 : i32
    return %c0_i32, %c0_i32_0 : i32, i32
  }
  func.func @transform_21(%arg0: i32) -> (i32, i32) {
    %c0_i32 = arith.constant 0 : i32
    %c0_i32_0 = arith.constant 0 : i32
    %c0_i32_1 = arith.constant 0 : i32
    return %c0_i32, %c0_i32_0 : i32, i32
  }
  func.func @transform_22(%arg0: i32) -> (i32, i32, i32) {
    %c0_i32 = arith.constant 0 : i32
    %c0_i32_0 = arith.constant 0 : i32
    %c0_i32_1 = arith.constant 0 : i32
    %c0_i32_2 = arith.constant 0 : i32
    return %c0_i32, %c0_i32_0, %c0_i32_1 : i32, i32, i32
  }
  func.func @transform_23(%arg0: i32) -> (i32, i32) {
    %c0_i32 = arith.constant 0 : i32
    %c0_i32_0 = arith.constant 0 : i32
    %c0_i32_1 = arith.constant 0 : i32
    return %c0_i32, %c0_i32_0 : i32, i32
  }
  func.func @transform_24(%arg0: i32) -> (i32, i32) {
    %c0_i32 = arith.constant 0 : i32
    %c0_i32_0 = arith.constant 0 : i32
    %c0_i32_1 = arith.constant 0 : i32
    return %c0_i32, %c0_i32_0 : i32, i32
  }
  func.func @transform_25(%arg0: i32) -> (i32, i32) {
    %c0_i32 = arith.constant 0 : i32
    %c0_i32_0 = arith.constant 0 : i32
    %c0_i32_1 = arith.constant 0 : i32
    return %c0_i32, %c0_i32_0 : i32, i32
  }
  func.func @transform_26(%arg0: i32) -> (i32, i32) {
    %c0_i32 = arith.constant 0 : i32
    %c0_i32_0 = arith.constant 0 : i32
    %c0_i32_1 = arith.constant 0 : i32
    return %c0_i32, %c0_i32_0 : i32, i32
  }
  func.func @transform_27(%arg0: i32) -> (i32, i32) {
    %c0_i32 = arith.constant 0 : i32
    %c0_i32_0 = arith.constant 0 : i32
    %c0_i32_1 = arith.constant 0 : i32
    return %c0_i32, %c0_i32_0 : i32, i32
  }
  func.func @transform_28(%arg0: i32) -> (i32, i32) {
    %c0_i32 = arith.constant 0 : i32
    %c0_i32_0 = arith.constant 0 : i32
    %c0_i32_1 = arith.constant 0 : i32
    return %c0_i32, %c0_i32_0 : i32, i32
  }
  func.func @transform_29(%arg0: i32) -> (i32, i32) {
    %c0_i32 = arith.constant 0 : i32
    %c0_i32_0 = arith.constant 0 : i32
    %c0_i32_1 = arith.constant 0 : i32
    return %c0_i32, %c0_i32_0 : i32, i32
  }
  func.func @transform_30(%arg0: i32) -> (i32, i32) {
    %c0_i32 = arith.constant 0 : i32
    %c0_i32_0 = arith.constant 0 : i32
    %c0_i32_1 = arith.constant 0 : i32
    return %c0_i32, %c0_i32_0 : i32, i32
  }
}

</mosaic_0001>

<bundles_post_ra>
// kernel: mlp_encoder_forward.1
= control target key start
LH: loop header
LB: loop body
LE: loop exit
PB: predicated region body
PF: predicated region fallthrough
CT: control target
= control target key end

     0   :  { %s3505_s6 = smov 1   ;;  %s3506_s10 = smov 2   ;;  %s4150_s0 = inlined_call_operand.smem [shape: u32[31], index: -1, kind: input, shape index: {}] }
   0x1   :  { %s3547_s5 = sld [smem:[%s4150_s0]]   ;;  %s3507_s14 = smov 3  }
   0x2   :  { %s3552_s9 = sld [smem:[%s4150_s0 + %s3505_s6]]   ;;  %s3508_s18 = smov 4  }
   0x3   :  { %s3557_s13 = sld [smem:[%s4150_s0 + %s3506_s10]]   ;;  %s3509_s22 = smov 5  }
   0x4   :  { %s3562_s17 = sld [smem:[%s4150_s0 + %s3507_s14]]   ;;  %s3510_s26 = smov 6  }
   0x5   :  { %s3567_s21 = sld [smem:[%s4150_s0 + %s3508_s18]]   ;;  %s3511_s30 = smov 7  }
   0x6   :  { %s3572_s25 = sld [smem:[%s4150_s0 + %s3509_s22]]   ;;  %s3512_s4 = smov 8  }
   0x7   :  { %s3577_s29 = sld [smem:[%s4150_s0 + %s3510_s26]]   ;;  %s3513_s10 = smov 9  }
   0x8   :  { %s3582_s3 = sld [smem:[%s4150_s0 + %s3511_s30]]   ;;  %s3514_s15 = smov 10  }
   0x9   :  { %s3587_s8 = sld [smem:[%s4150_s0 + %s3512_s4]]   ;;  %s3515_s20 = smov 11  }
   0xa   :  { %4157 = sst [smem:[#allocation8_spill]] %s3562_s17  ;;  %s3516_s26 = smov 12  }
   0xb   :  { %s3592_s14 = sld [smem:[%s4150_s0 + %s3513_s10]]   ;;  %s3517_s1 = smov 13  }
   0xc   :  { %s3597_s19 = sld [smem:[%s4150_s0 + %s3514_s15]]   ;;  %s3518_s7 = smov 14  }
   0xd   :  { %s3602_s24 = sld [smem:[%s4150_s0 + %s3515_s20]]   ;;  %s3519_s15 = smov 15  }
   0xe   :  { %s3607_s30 = sld [smem:[%s4150_s0 + %s3516_s26]]   ;;  %s3520_s22 = smov 16  }
   0xf   :  { %s3612_s6 = sld [smem:[%s4150_s0 + %s3517_s1]]   ;;  %s3521_s28 = smov 17  }
  0x10   :  { %s3617_s12 = sld [smem:[%s4150_s0 + %s3518_s7]]   ;;  %s3522_s7 = smov 18  }
  0x11   :  { %s3622_s20 = sld [smem:[%s4150_s0 + %s3519_s15]]   ;;  %s3523_s15 = smov 19  }
  0x12   :  { %s3627_s27 = sld [smem:[%s4150_s0 + %s3520_s22]]   ;;  %s3524_s22 = smov 20  }
  0x13   :  { %s3632_s4 = sld [smem:[%s4150_s0 + %s3521_s28]]   ;;  %s3525_s28 = smov 21  }
  0x14   :  { %s3637_s17 = sld [smem:[%s4150_s0 + %s3522_s7]]   ;;  %s3526_s7 = smov 22  }
  0x17   :  { %4158 = sst [smem:[#allocation9_spill]] %s3622_s20 }
  0x18   :  { %4159 = sst [smem:[#allocation10_spill]] %s3627_s27 }
  0x19   :  { %4160 = sst [smem:[#allocation11_spill]] %s3632_s4 }
  0x1a   :  { %4161 = sst [smem:[#allocation12_spill]] %s3637_s17 }
  0x1b   :  { %s3642_s20 = sld [smem:[%s4150_s0 + %s3523_s15]]   ;;  %s3527_s15 = smov 23  }
  0x1c   :  { %s3647_s27 = sld [smem:[%s4150_s0 + %s3524_s22]]   ;;  %s3528_s22 = smov 24  }
  0x1d   :  { %s3652_s4 = sld [smem:[%s4150_s0 + %s3525_s28]]   ;;  %s3529_s28 = smov 25  }
  0x1e   :  { %s3657_s17 = sld [smem:[%s4150_s0 + %s3526_s7]]   ;;  %s3530_s7 = smov 26  }
  0x21   :  { %4162 = sst [smem:[#allocation13_spill]] %s3642_s20 }
  0x22   :  { %4163 = sst [smem:[#allocation14_spill]] %s3647_s27 }
  0x23   :  { %4164 = sst [smem:[#allocation15_spill]] %s3652_s4 }
  0x24   :  { %4165 = sst [smem:[#allocation16_spill]] %s3657_s17 }
  0x25   :  { %s3662_s20 = sld [smem:[%s4150_s0 + %s3527_s15]]   ;;  %s3531_s15 = smov 27  }
  0x26   :  { %s3667_s27 = sld [smem:[%s4150_s0 + %s3528_s22]]   ;;  %s3532_s22 = smov 28  }
  0x27   :  { %s3672_s4 = sld [smem:[%s4150_s0 + %s3529_s28]]   ;;  %s3533_s28 = smov 29  }
  0x28   :  { %s3677_s17 = sld [smem:[%s4150_s0 + %s3530_s7]]   ;;  %s3534_s7 = smov 30  }
  0x2b   :  { %4166 = sst [smem:[#allocation17_spill]] %s3662_s20 }
  0x2c   :  { %4167 = sst [smem:[#allocation18_spill]] %s3667_s27 }
  0x2d   :  { %4168 = sst [smem:[#allocation19_spill]] %s3672_s4 }
  0x2e   :  { %4169 = sst [smem:[#allocation20_spill]] %s3677_s17 }
  0x2f   :  { %s3682_s20 = sld [smem:[%s4150_s0 + %s3531_s15]]  }
  0x30   :  { %s3687_s27 = sld [smem:[%s4150_s0 + %s3532_s22]]  }
  0x31   :  { %s3692_s4 = sld [smem:[%s4150_s0 + %s3533_s28]]  }
  0x32   :  { %s3697_s17 = sld [smem:[%s4150_s0 + %s3534_s7]]  }
  0x33   :  { %67 = vsyncpa [#allocation3], 0  ;;  %v126_v0 = vld [vmem:[%s3567_s21] sm:$0xff]  ;;  %vm140_vm0 = vcmask 64512   ;;  %v3535_v2 = vmov 0.0   ;;  %vm3536_vm1 = vmmov 0  }
  0x34   :  { %v125_v1 = vld [vmem:[%s3547_s5] sm:$0xff]  ;;  %3106 = vmatprep.subr.mxu0 %v3535_v2  ;;  %3108 = vmatprep.mubr.msk.f32.mxu0 %vm3536_vm1, %v3535_v2 }
  0x35   :  { %68 = vsyncpa [#allocation5], 0  ;;  %3107 = vmatpush3.msra.mxu0 %v126_v0  ;;  %3111 = vmatprep.subr.mxu1 %v3535_v2  ;;  %v129_v3 = vld [vmem:[%s3577_s29 + $0x8] sm:$0xff]  ;;  %v128_v4 = vld [vmem:[%s3577_s29] sm:$0xff]  ;;  %vm214_vm2 = vcmask 130048   ;;  %s4170_s0 = sld [smem:[#allocation9_spill]] }
  0x36   :  { %3109 = vmatmul.mubr.msk.f32.vlgmr.msra.gmra.mxu0 %vm140_vm0, %v125_v1  ;;  %3115 = vmatprep.mubr.msk.f32.mxu1 %vm3536_vm1, %v3535_v2  ;;  %v2943_v5 = vld [vmem:[%s3572_s25] ss:$0 sm:$0xff]  ;;  %v132_v35 = vld [vmem:[%s3587_s8 + $0x8] sm:$0xff]  ;;  %s4171_s5 = sld [smem:[#allocation10_spill]] }
  0x37   :  { %3118 = vmatprep.subr.mxu0 %v3535_v2  ;;  %3122 = vmatprep.mubr.msk.f32.mxu0 %vm3536_vm1, %v3535_v2  ;;  %v131_v36 = vld [vmem:[%s3587_s8] sm:$0xff]  ;;  %s4175_s21 = sld [smem:[#allocation14_spill]] }
  0x38   :  { %3112 = vmatpush3.msra.mxu1 %v129_v3  ;;  %3119 = vmatpush3.msra.mxu0 %v132_v35  ;;  %v2946_v37 = vld [vmem:[%s3582_s3] ss:$0 sm:$0xff]  ;;  %s4176_s25 = sld [smem:[#allocation13_spill]] }
  0x39   :  { %3113 = vmatprep.subr.mxu1 %v3535_v2  ;;  %3120 = vmatprep.subr.mxu0 %v3535_v2  ;;  %s4177_s29 = sld [smem:[#allocation16_spill]] }
  0x3a   :  { %3114 = vmatpush3.msra.mxu1 %v128_v4  ;;  %3121 = vmatpush3.msra.mxu0 %v131_v36  ;;  %v464_v4 = vld [vmem:[%s3597_s19 + $0x8] sm:$0xff]  ;;  %s4178_s3 = sld [smem:[#allocation15_spill]] }
  0x3b   :  { %3125 = vmatprep.subr.mxu1 %v3535_v2  ;;  %3132 = vmatprep.subr.mxu0 %v3535_v2  ;;  %s4179_s8 = sld [smem:[#allocation18_spill]] }
  0xf6   :  { %v210_v6 = vpop.f32.mrf.mxu0 }
  0xf7   :  { %v211_v7 = vadd.f32 %v2943_v5, %v210_v6  ;;  %v463_v5 = vld [vmem:[%s3597_s19] sm:$0xff] }
  0xf8   :  { %v3110_v8 = vpop.f32.mrf.mxu0  ;;  %v2949_v6 = vld [vmem:[%s3592_s14] ss:$0 sm:$0xff]  ;;  %s4180_s14 = sld [smem:[#allocation17_spill]] }
  0xf9   :  { %v215_v9 = vsel %vm214_vm2, %v211_v7, 0.0 }
  0xfa   :  { %v216_v10 = vrot.slane %v215_v9, 4 }
  0xfc   :  { %v217_v11 = vadd.f32 %v216_v10, %v215_v9 }
  0xfe   :  { %v218_v12 = vrot.slane %v217_v11, 2 }
 0x100   :  { %v219_v13 = vadd.f32 %v218_v12, %v217_v11 }
 0x102   :  { %v220_v14 = vrot.slane %v219_v13, 1 }
 0x104   :  { %v221_v15 = vadd.f32 %v220_v14, %v219_v13 }
 0x106   :  { %v223_v16 = vmul.f32 0.125, %v221_v15 }
 0x108   :  { %v224_v17 = vsub.f32 %v211_v7, %v223_v16 }
 0x10a   :  { %v225_v18 = vmul.f32 %v224_v17, %v224_v17 }
 0x10c   :  { %v226_v19 = vsel %vm214_vm2, %v225_v18, 0.0 }
 0x10d   :  { %v227_v20 = vrot.slane %v226_v19, 4 }
 0x10f   :  { %v228_v21 = vadd.f32 %v227_v20, %v226_v19 }
 0x111   :  { %v229_v22 = vrot.slane %v228_v21, 2 }
 0x113   :  { %v230_v23 = vadd.f32 %v229_v22, %v228_v21 }
 0x115   :  { %v231_v24 = vrot.slane %v230_v23, 1 }
 0x117   :  { %v232_v25 = vadd.f32 %v231_v24, %v230_v23 }
 0x119   :  { %v233_v26 = vmul.f32 0.125, %v232_v25 }
 0x11b   :  { %v234_v27 = vadd.f32 1e-05, %v233_v26 }
 0x11d   :  { %3369 = vrsqrt.f32 %v234_v27 }
 0x12a   :  { %v3370_v28 = vpop.eup %3369 }
 0x12b   :  { %v236_v29 = vmul.f32 %v3370_v28, %v224_v17 }
 0x12d   :  { %v238_v30 = vmin.f32 %v236_v29, 0.0  ;;  %vm237_vm3 = vcmp.gt.f32.partialorder %v236_v29, 0.0 }
 0x12f   :  { %v239_v31 = vmul.f32 1.442695, %v238_v30 }
 0x131   :  { %3371 = vpow2.f32 %v239_v31 }
 0x13e   :  { %v3372_v32 = vpop.eup %3371 }
 0x13f   :  { %v2945_v33 = vadd.f32 -1.0, %v3372_v32 }
 0x141   :  { %v242_v34 = vsel %vm237_vm3, %v236_v29, %v2945_v33 }
 0x142   :  { %3116 = vmatmul.mubr.msk.f32.vlgmr.msra.gmra.mxu1 %vm214_vm2, %v242_v34 }
 0x143   :  { %3129 = vmatprep.mubr.msk.f32.mxu1 %vm3536_vm1, %v3535_v2  ;;  %3126 = vmatpush3.msra.mxu1 %v464_v4 }
 0x144   :  { %3127 = vmatprep.subr.mxu1 %v3535_v2 }
 0x145   :  { %3128 = vmatpush3.msra.mxu1 %v463_v5 }
 0x146   :  { %3143 = vmatprep.subr.mxu1 %v3535_v2 }
 0x202   :  { %v318_v38 = vpop.f32.mrf.mxu1 }
 0x203   :  { %v319_v39 = vadd.f32 %v2946_v37, %v318_v38 }
 0x204   :  { %v3117_v40 = vpop.f32.mrf.mxu1 }
 0x205   :  { %v322_v41 = vsel %vm214_vm2, %v319_v39, 0.0  ;;  %v3750_v40 = vld [vmem:[%s3557_s13] sm:$0xff] }
 0x206   :  { %v323_v42 = vrot.slane %v322_v41, 4 }
 0x208   :  { %v324_v43 = vadd.f32 %v323_v42, %v322_v41  ;;  %v3759_v42 = vld [vmem:[%s3552_s9 + $0x8] sm:$0xff] }
 0x20a   :  { %v325_v44 = vrot.slane %v324_v43, 2 }
 0x20c   :  { %v326_v45 = vadd.f32 %v325_v44, %v324_v43  ;;  %v3764_v43 = vld [vmem:[%s3557_s13 + $0x8] sm:$0xff]  ;;  %v3777_v44 = vld [vmem:[%s3552_s9 + $0x10] sm:$0xff] }
 0x20e   :  { %v327_v46 = vrot.slane %v326_v45, 1 }
 0x210   :  { %v328_v47 = vadd.f32 %v327_v46, %v326_v45  ;;  %v3780_v45 = vld [vmem:[%s3557_s13 + $0x10] sm:$0xff]  ;;  %v2960_v46 = vld [vmem:[%s3607_s30] ss:$0 sm:$0xff]  ;;  %s4173_s13 = sld [smem:[#allocation11_spill]] }
 0x212   :  { %v329_v48 = vmul.f32 0.125, %v328_v47  ;;  %v2959_v47 = vld [vmem:[%s3602_s24] ss:$0 sm:$0xff] }
 0x214   :  { %v330_v49 = vsub.f32 %v319_v39, %v329_v48  ;;  %v3747_v39 = vld [vmem:[%s3552_s9] sm:$0xff]  ;;  %s4172_s9 = sld [smem:[#allocation12_spill]] }
 0x216   :  { %v331_v50 = vmul.f32 %v330_v49, %v330_v49 }
 0x218   :  { %v332_v51 = vsel %vm214_vm2, %v331_v50, 0.0 }
 0x219   :  { %v333_v52 = vrot.slane %v332_v51, 4 }
 0x21b   :  { %v334_v53 = vadd.f32 %v333_v52, %v332_v51 }
 0x21d   :  { %v335_v54 = vrot.slane %v334_v53, 2 }
 0x21f   :  { %v336_v55 = vadd.f32 %v335_v54, %v334_v53 }
 0x221   :  { %v337_v56 = vrot.slane %v336_v55, 1 }
 0x223   :  { %v338_v57 = vadd.f32 %v337_v56, %v336_v55 }
 0x225   :  { %v339_v58 = vmul.f32 0.125, %v338_v57 }
 0x227   :  { %v340_v59 = vadd.f32 1e-05, %v339_v58 }
 0x229   :  { %3373 = vrsqrt.f32 %v340_v59 }
 0x236   :  { %v3374_v60 = vpop.eup %3373 }
 0x237   :  { %v342_v61 = vmul.f32 %v3374_v60, %v330_v49 }
 0x239   :  { %v344_v62 = vmin.f32 %v342_v61, 0.0  ;;  %vm343_vm4 = vcmp.gt.f32.partialorder %v342_v61, 0.0 }
 0x23b   :  { %v345_v63 = vmul.f32 1.442695, %v344_v62 }
 0x23d   :  { %3375 = vpow2.f32 %v345_v63 }
 0x24a   :  { %v3376_v0 = vpop.eup %3375 }
 0x24b   :  { %v2948_v1 = vadd.f32 -1.0, %v3376_v0 }
 0x24d   :  { %v348_v3 = vsel %vm343_vm4, %v342_v61, %v2948_v1 }
 0x24e   :  { %3123 = vmatmul.mubr.msk.f32.vlgmr.msra.gmra.mxu0 %vm214_vm2, %v348_v3 }
 0x24f   :  { %3134 = vmatprep.mubr.msk.f32.mxu0 %vm3536_vm1, %v3535_v2 }
 0x30e   :  { %v424_v7 = vpop.f32.mrf.mxu0 }
 0x30f   :  { %v425_v8 = vadd.f32 %v2949_v6, %v424_v7 }
 0x310   :  { %v3124_v9 = vpop.f32.mrf.mxu0 }
 0x311   :  { %v428_v10 = vsel %vm214_vm2, %v425_v8, 0.0  ;;  %v3817_v9 = vld [vmem:[%s3617_s12 + $0x8] sm:$0xff] }
 0x312   :  { %v429_v11 = vrot.slane %v428_v10, 4 }
 0x314   :  { %v430_v12 = vadd.f32 %v429_v11, %v428_v10  ;;  %v3820_v10 = vld [vmem:[%s3612_s6 + $0x8] sm:$0xff]  ;;  %v3823_v11 = vld [vmem:[%s3617_s12] sm:$0xff] }
 0x316   :  { %v431_v13 = vrot.slane %v430_v12, 2 }
 0x318   :  { %v432_v14 = vadd.f32 %v431_v13, %v430_v12  ;;  %v3828_v12 = vld [vmem:[%s3612_s6] sm:$0xff] }
 0x31a   :  { %v433_v15 = vrot.slane %v432_v14, 1 }
 0x31c   :  { %v434_v16 = vadd.f32 %v433_v15, %v432_v14 }
 0x31e   :  { %v435_v17 = vmul.f32 0.125, %v434_v16 }
 0x320   :  { %v436_v18 = vsub.f32 %v425_v8, %v435_v17 }
 0x322   :  { %v437_v19 = vmul.f32 %v436_v18, %v436_v18 }
 0x324   :  { %v438_v20 = vsel %vm214_vm2, %v437_v19, 0.0 }
 0x325   :  { %v439_v21 = vrot.slane %v438_v20, 4 }
 0x327   :  { %v440_v22 = vadd.f32 %v439_v21, %v438_v20 }
 0x329   :  { %v441_v23 = vrot.slane %v440_v22, 2 }
 0x32b   :  { %v442_v24 = vadd.f32 %v441_v23, %v440_v22 }
 0x32d   :  { %v443_v25 = vrot.slane %v442_v24, 1 }
 0x32f   :  { %v444_v26 = vadd.f32 %v443_v25, %v442_v24 }
 0x331   :  { %v445_v27 = vmul.f32 0.125, %v444_v26 }
 0x333   :  { %v446_v28 = vadd.f32 1e-05, %v445_v27 }
 0x335   :  { %3377 = vrsqrt.f32 %v446_v28 }
 0x342   :  { %v3378_v29 = vpop.eup %3377 }
 0x343   :  { %v448_v30 = vmul.f32 %v3378_v29, %v436_v18 }
 0x345   :  { %v450_v31 = vmin.f32 %v448_v30, 0.0  ;;  %vm449_vm5 = vcmp.gt.f32.partialorder %v448_v30, 0.0 }
 0x347   :  { %v451_v32 = vmul.f32 1.442695, %v450_v31 }
 0x349   :  { %3379 = vpow2.f32 %v451_v32 }
 0x356   :  { %v3380_v33 = vpop.eup %3379 }
 0x357   :  { %v2951_v34 = vadd.f32 -1.0, %v3380_v33 }
 0x359   :  { %v3738_v35 = vsel %vm449_vm5, %v448_v30, %v2951_v34 }
 0x35a   :  { %3130 = vmatmul.mubr.msk.f32.vlgmr.msra.gmra.mxu1 %vm214_vm2, %v3738_v35  ;;  %455 = vst.msk [vmem:[#allocation4] sm:$0xff] %vm214_vm2, %v3738_v35 }
 0x35b   :  { %3145 = vmatprep.mubr.msk.f32.mxu1 %vm3536_vm1, %v3535_v2 }
 0x41a   :  { %v534_v36 = vpop.f32.mrf.mxu1 }
 0x41b   :  { %vm538_vm6 = vcmp.gt.f32.partialorder %v534_v36, 0.0  ;;  %v539_v37 = vmul.f32 0.2, %v534_v36 }
 0x41c   :  { %v3131_v38 = vpop.f32.mrf.mxu1 }
 0x41d   :  { %v540_v41 = vsel %vm538_vm6, %v534_v36, %v539_v37 }
 0x41e   :  { %3133 = vmatpush3.msra.mxu0 %v540_v41  ;;  %3144 = vmatpush3.msra.mxu1 %v540_v41 }
 0x41f   :  { %3135 = vmatmul.mubr.msk.f32.vlgmr.msra.gmra.mxu0 %vm140_vm0, %v3747_v39  ;;  %3146 = vmatmul.mubr.msk.f32.vlgmr.msra.gmra.mxu1 %vm140_vm0, %v3750_v40 }
 0x420   :  { %3137 = vmatprep.mubr.msk.f32.mxu0 %vm3536_vm1, %v3535_v2  ;;  %3148 = vmatprep.mubr.msk.f32.mxu1 %vm3536_vm1, %v3535_v2 }
 0x421   :  { %3154 = vmatprep.subr.mxu0 %v3535_v2  ;;  %3167 = vmatprep.subr.mxu1 %v3535_v2 }
 0x422   :  { %3155 = vmatpush3.msra.mxu0 %v3817_v9  ;;  %3168 = vmatpush3.msra.mxu1 %v3820_v10 }
 0x423   :  { %3138 = vmatmul.mubr.msk.f32.gmra.mxu0 %vm140_vm0, %v3759_v42  ;;  %3149 = vmatmul.mubr.msk.f32.gmra.mxu1 %vm140_vm0, %v3764_v43 }
 0x424   :  { %3140 = vmatprep.mubr.msk.f32.mxu0 %vm3536_vm1, %v3535_v2  ;;  %3151 = vmatprep.mubr.msk.f32.mxu1 %vm3536_vm1, %v3535_v2 }
 0x425   :  { %3156 = vmatprep.subr.mxu0 %v3535_v2  ;;  %3169 = vmatprep.subr.mxu1 %v3535_v2 }
 0x426   :  { %3157 = vmatpush3.msra.mxu0 %v3823_v11  ;;  %3170 = vmatpush3.msra.mxu1 %v3828_v12 }
 0x427   :  { %3141 = vmatmul.mubr.msk.f32.gmra.mxu0 %vm140_vm0, %v3777_v44  ;;  %3152 = vmatmul.mubr.msk.f32.gmra.mxu1 %vm140_vm0, %v3780_v45 }
 0x428   :  { %3158 = vmatprep.mubr.msk.f32.mxu0 %vm3536_vm1, %v3535_v2  ;;  %3171 = vmatprep.mubr.msk.f32.mxu1 %vm3536_vm1, %v3535_v2 }
 0x429   :  { %3180 = vmatprep.subr.mxu0 %v3535_v2  ;;  %3187 = vmatprep.subr.mxu1 %v3535_v2 }
 0x4df   :  { %v3792_v48 = vpop.f32.mrf.mxu0  ;;  %v3794_v49 = vpop.f32.mrf.mxu1 }
 0x4e0   :  { %v757_v50 = vmul.f32 %v2960_v46, %v3794_v49  ;;  %v726_v51 = vmul.f32 %v2959_v47, %v3792_v48 }
 0x4e1   :  { %v3136_v52 = vpop.f32.mrf.mxu0  ;;  %v3147_v53 = vpop.f32.mrf.mxu1 }
 0x4e2   :  { %v729_v54 = vsel %vm214_vm2, %v726_v51, 0.0  ;;  %v760_v58 = vsel %vm214_vm2, %v757_v50, 0.0 }
 0x4e3   :  { %730 = vadd.xlane.f32.xlu0 %v729_v54  ;;  %v3799_v55 = vpop.f32.mrf.mxu0  ;;  %v3801_v56 = vpop.f32.mrf.mxu1 }
 0x4e4   :  { %v758_v57 = vmul.f32 %v2960_v46, %v3801_v56  ;;  %v727_v59 = vmul.f32 %v2959_v47, %v3799_v55 }
 0x4e5   :  { %v3139_v60 = vpop.f32.mrf.mxu0  ;;  %v3150_v61 = vpop.f32.mrf.mxu1 }
 0x4e6   :  { %v732_v62 = vsel %vm214_vm2, %v727_v59, 0.0  ;;  %v763_v4 = vsel %vm214_vm2, %v758_v57, 0.0 }
 0x4e7   :  { %761 = vadd.xlane.f32.xlu0 %v760_v58  ;;  %733 = vadd.xlane.f32.xlu1 %v732_v62  ;;  %v3807_v63 = vpop.f32.mrf.mxu0  ;;  %v3809_v0 = vpop.f32.mrf.mxu1 }
 0x4e8   :  { %v728_v1 = vmul.f32 %v2959_v47, %v3807_v63  ;;  %v759_v3 = vmul.f32 %v2960_v46, %v3809_v0 }
 0x4e9   :  { %v3153_v5 = vpop.f32.mrf.mxu1  ;;  %v3142_v6 = vpop.f32.mrf.mxu0 }
 0x4ea   :  { %v735_v7 = vsel %vm214_vm2, %v728_v1, 0.0  ;;  %v766_v8 = vsel %vm214_vm2, %v759_v3, 0.0 }
 0x4eb   :  { %764 = vadd.xlane.f32.xlu1 %v763_v4  ;;  %736 = vadd.xlane.f32.xlu0 %v735_v7 }
 0x4ef   :  { %767 = vadd.xlane.f32.xlu1 %v766_v8 }
 0x56c   :  { %v731_v13 = vpop.xlane.xlu0 %730 }
 0x56d   :  { %vm738_vm7 = vcmp.gt.f32.partialorder %v731_v13, 0.0  ;;  %v741_v14 = vmul.f32 0.2, %v731_v13 }
 0x56f   :  { %v744_v15 = vsel %vm738_vm7, %v731_v13, %v741_v14  ;;  %vm1556_vm7 = vcmask 7168  }
 0x570   :  { %v762_v16 = vpop.xlane.xlu0 %761  ;;  %v734_v17 = vpop.xlane.xlu1 %733  ;;  %v747_v21 = vmul.f32 0.002, %v744_v15 }
 0x571   :  { %vm769_vm8 = vcmp.gt.f32.partialorder %v762_v16, 0.0  ;;  %v772_v18 = vmul.f32 0.2, %v762_v16  ;;  %vm739_vm9 = vcmp.gt.f32.partialorder %v734_v17, 0.0  ;;  %v742_v19 = vmul.f32 0.2, %v734_v17 }
 0x573   :  { %v775_v20 = vsel %vm769_vm8, %v762_v16, %v772_v18  ;;  %v745_v23 = vsel %vm739_vm9, %v734_v17, %v742_v19  ;;  %vm1560_vm8 = vcmask 15360  }
 0x574   :  { %v778_v22 = vmul.f32 0.002, %v775_v20  ;;  %v765_v24 = vpop.xlane.xlu1 %764  ;;  %v737_v25 = vpop.xlane.xlu0 %736  ;;  %v748_v29 = vmul.f32 0.002, %v745_v23 }
 0x575   :  { %vm770_vm10 = vcmp.gt.f32.partialorder %v765_v24, 0.0  ;;  %v773_v26 = vmul.f32 0.2, %v765_v24  ;;  %vm740_vm11 = vcmp.gt.f32.partialorder %v737_v25, 0.0  ;;  %v743_v27 = vmul.f32 0.2, %v737_v25 }
 0x576   :  { %v781_v28 = vmax.f32 %v747_v21, %v778_v22 }
 0x577   :  { %v776_v30 = vsel %vm770_vm10, %v765_v24, %v773_v26  ;;  %v746_v34 = vsel %vm740_vm11, %v737_v25, %v743_v27 }
 0x578   :  { %v784_v31 = vsub.f32 %v747_v21, %v781_v28  ;;  %v799_v32 = vsub.f32 %v778_v22, %v781_v28  ;;  %v779_v33 = vmul.f32 0.002, %v776_v30  ;;  %v768_v36 = vpop.xlane.xlu1 %767  ;;  %v749_v47 = vmul.f32 0.002, %v746_v34 }
 0x579   :  { %vm771_vm12 = vcmp.gt.f32.partialorder %v768_v36, 0.0  ;;  %v774_v37 = vmul.f32 0.2, %v768_v36 }
 0x57a   :  { %v787_v38 = vmul.f32 1.442695, %v784_v31  ;;  %v802_v41 = vmul.f32 1.442695, %v799_v32  ;;  %v782_v46 = vmax.f32 %v748_v29, %v779_v33 }
 0x57b   :  { %v777_v50 = vsel %vm771_vm12, %v768_v36, %v774_v37 }
 0x57c   :  { %3381 = vpow2.f32 %v787_v38  ;;  %v785_v51 = vsub.f32 %v748_v29, %v782_v46  ;;  %v800_v52 = vsub.f32 %v779_v33, %v782_v46  ;;  %v780_v53 = vmul.f32 0.002, %v777_v50  ;;  %v2969_v33 = vld [vmem:[%s3597_s19 + $0x18] sm:$0xff]  ;;  %v2968_v38 = vld [vmem:[%s3597_s19 + $0x10] sm:$0xff]  ;;  %v3878_v50 = vld [vmem:[%s4170_s0] ss:$0 sm:$0xff] }
 0x57d   :  { %3383 = vpow2.f32 %v802_v41  ;;  %s4181_s19 = sld [smem:[#allocation20_spill]] }
 0x57e   :  { %v789_v54 = vmul.f32 1.442695, %v785_v51  ;;  %v804_v57 = vmul.f32 1.442695, %v800_v52  ;;  %v783_v58 = vmax.f32 %v749_v47, %v780_v53 }
 0x580   :  { %3385 = vpow2.f32 %v789_v54  ;;  %v786_v59 = vsub.f32 %v749_v47, %v783_v58  ;;  %v801_v60 = vsub.f32 %v780_v53, %v783_v58 }
 0x581   :  { %3387 = vpow2.f32 %v804_v57 }
 0x582   :  { %v791_v61 = vmul.f32 1.442695, %v786_v59  ;;  %v806_v62 = vmul.f32 1.442695, %v801_v60 }
 0x584   :  { %3389 = vpow2.f32 %v791_v61 }
 0x585   :  { %3391 = vpow2.f32 %v806_v62 }
 0x589   :  { %v3382_v1 = vpop.eup %3381 }
 0x58a   :  { %v3384_v3 = vpop.eup %3383  ;;  %v793_v4 = vmul.f32 1.442695, %v3382_v1 }
 0x58b   :  { %v808_v5 = vmul.f32 1.442695, %v3384_v3 }
 0x58c   :  { %3393 = vpow2.f32 %v793_v4 }
 0x58d   :  { %v3386_v6 = vpop.eup %3385  ;;  %3395 = vpow2.f32 %v808_v5 }
 0x58e   :  { %v3388_v7 = vpop.eup %3387  ;;  %v795_v8 = vmul.f32 1.442695, %v3386_v6 }
 0x58f   :  { %v810_v13 = vmul.f32 1.442695, %v3388_v7 }
 0x590   :  { %3397 = vpow2.f32 %v795_v8 }
 0x591   :  { %v3390_v14 = vpop.eup %3389  ;;  %3399 = vpow2.f32 %v810_v13 }
 0x592   :  { %v3392_v15 = vpop.eup %3391  ;;  %v797_v16 = vmul.f32 1.442695, %v3390_v14 }
 0x593   :  { %v812_v17 = vmul.f32 1.442695, %v3392_v15 }
 0x594   :  { %3401 = vpow2.f32 %v797_v16 }
 0x595   :  { %3403 = vpow2.f32 %v812_v17 }
 0x599   :  { %v3394_v18 = vpop.eup %3393 }
 0x59a   :  { %v3396_v19 = vpop.eup %3395 }
 0x59b   :  { %v814_v20 = vadd.f32 %v3396_v19, %v3394_v18 }
 0x59d   :  { %v3398_v21 = vpop.eup %3397  ;;  %3405 = vrcp.f32 %v814_v20 }
 0x59e   :  { %v3400_v22 = vpop.eup %3399 }
 0x59f   :  { %v815_v23 = vadd.f32 %v3400_v22, %v3398_v21 }
 0x5a1   :  { %v3402_v24 = vpop.eup %3401  ;;  %3407 = vrcp.f32 %v815_v23 }
 0x5a2   :  { %v3404_v25 = vpop.eup %3403 }
 0x5a3   :  { %v816_v26 = vadd.f32 %v3404_v25, %v3402_v24 }
 0x5a5   :  { %3409 = vrcp.f32 %v816_v26 }
 0x5aa   :  { %v3406_v27 = vpop.eup %3405 }
 0x5ab   :  { %v823_v28 = vmul.f32 %v3406_v27, %v3396_v19  ;;  %v3836_v29 = vmul.f32 %v3406_v27, %v3394_v18 }
 0x5ad   :  { %v831_v30 = vmul.f32 %v823_v28, %v3794_v49  ;;  %v826_v31 = vmul.f32 %v3836_v29, %v3792_v48 }
 0x5ae   :  { %v3408_v32 = vpop.eup %3407 }
 0x5af   :  { %3159 = vmatmul.mubr.msk.f32.vlgmr.msra.gmra.mxu0 %vm214_vm2, %v831_v30  ;;  %3172 = vmatmul.mubr.msk.f32.vlgmr.msra.gmra.mxu1 %vm214_vm2, %v826_v31  ;;  %v824_v34 = vmul.f32 %v3408_v32, %v3400_v22  ;;  %v3844_v36 = vmul.f32 %v3408_v32, %v3398_v21 }
 0x5b0   :  { %3161 = vmatprep.mubr.msk.f32.mxu0 %vm3536_vm1, %v3535_v2  ;;  %3174 = vmatprep.mubr.msk.f32.mxu1 %vm3536_vm1, %v3535_v2 }
 0x5b1   :  { %v832_v49 = vmul.f32 %v824_v34, %v3801_v56  ;;  %v827_v48 = vmul.f32 %v3844_v36, %v3799_v55  ;;  %3181 = vmatpush3.msra.mxu0 %v2969_v33 }
 0x5b2   :  { %v3410_v37 = vpop.eup %3409  ;;  %3182 = vmatprep.subr.mxu0 %v3535_v2 }
 0x5b3   :  { %3162 = vmatmul.mubr.msk.f32.gmra.mxu0 %vm214_vm2, %v832_v49  ;;  %3175 = vmatmul.mubr.msk.f32.gmra.mxu1 %vm214_vm2, %v827_v48  ;;  %v825_v41 = vmul.f32 %v3410_v37, %v3404_v25  ;;  %v3857_v46 = vmul.f32 %v3410_v37, %v3402_v24 }
 0x5b4   :  { %3164 = vmatprep.mubr.msk.f32.mxu0 %vm3536_vm1, %v3535_v2  ;;  %3177 = vmatprep.mubr.msk.f32.mxu1 %vm3536_vm1, %v3535_v2 }
 0x5b5   :  { %v833_v55 = vmul.f32 %v825_v41, %v3809_v0  ;;  %v828_v56 = vmul.f32 %v3857_v46, %v3807_v63  ;;  %3183 = vmatpush3.msra.mxu0 %v2968_v38 }
 0x5b6   :  { %3198 = vmatprep.subr.mxu0 %v3535_v2 }
 0x5b7   :  { %3165 = vmatmul.mubr.msk.f32.gmra.mxu0 %vm214_vm2, %v833_v55  ;;  %3178 = vmatmul.mubr.msk.f32.gmra.mxu1 %vm214_vm2, %v828_v56 }
 0x5b8   :  { %3184 = vmatprep.mubr.msk.f32.mxu0 %vm3536_vm1, %v3535_v2  ;;  %3189 = vmatprep.mubr.msk.f32.mxu1 %vm3536_vm1, %v3535_v2 }
 0x5bb   :  { %3185 = vmatmul.mubr.msk.f32.vlgmr.msra.gmra.mxu0 %vm214_vm2, %v3738_v35 }
 0x5bc   :  { %3200 = vmatprep.mubr.msk.f32.mxu0 %vm3536_vm1, %v3535_v2 }
 0x66f   :  { %v911_v63 = vpop.f32.mrf.mxu0  ;;  %v1000_v0 = vpop.f32.mrf.mxu1 }
 0x670   :  { %v1001_v47 = vadd.f32 %v1000_v0, %v911_v63 }
 0x671   :  { %v3160_v51 = vpop.f32.mrf.mxu0  ;;  %v3173_v52 = vpop.f32.mrf.mxu1 }
 0x672   :  { %v3881_v57 = vadd.f32 %v3878_v50, %v1001_v47 }
 0x673   :  { %v916_v53 = vpop.f32.mrf.mxu0  ;;  %v1005_v54 = vpop.f32.mrf.mxu1 }
 0x674   :  { %v1006_v58 = vadd.f32 %v1005_v54, %v916_v53  ;;  %v1564_v1 = vsel %vm214_vm2, %v3881_v57, 0.0 }
 0x675   :  { %v3163_v59 = vpop.f32.mrf.mxu0  ;;  %v3176_v60 = vpop.f32.mrf.mxu1 }
 0x676   :  { %v3884_v35 = vadd.f32 %v3878_v50, %v1006_v58 }
 0x677   :  { %v921_v61 = vpop.f32.mrf.mxu0  ;;  %v1010_v62 = vpop.f32.mrf.mxu1 }
 0x678   :  { %v1565_v3 = vsel %vm214_vm2, %v3884_v35, 0.0  ;;  %v1011_v4 = vadd.f32 %v1010_v62, %v921_v61 }
 0x679   :  { %v1566_v5 = vadd.f32 %v1565_v3, %v1564_v1  ;;  %v3166_v6 = vpop.f32.mrf.mxu0  ;;  %v3179_v7 = vpop.f32.mrf.mxu1 }
 0x67a   :  { %v3891_v8 = vadd.f32 %v3878_v50, %v1011_v4 }
 0x67b   :  { %v1093_v13 = vpop.f32.mrf.mxu0 }
 0x67c   :  { %v1567_v14 = vsel %vm214_vm2, %v3891_v8, 0.0  ;;  %vm1097_vm13 = vcmp.gt.f32.partialorder %v1093_v13, 0.0  ;;  %v1098_v15 = vmul.f32 0.2, %v1093_v13 }
 0x67d   :  { %v3895_v16 = vadd.f32 %v1567_v14, %v1566_v5  ;;  %v3186_v17 = vpop.f32.mrf.mxu0 }
 0x67e   :  { %v1099_v18 = vsel %vm1097_vm13, %v1093_v13, %v1098_v15 }
 0x67f   :  { %3188 = vmatpush3.msra.mxu1 %v1099_v18  ;;  %3199 = vmatpush3.msra.mxu0 %v1099_v18 }
 0x680   :  { %3190 = vmatmul.mubr.msk.f32.vlgmr.msra.gmra.mxu1 %vm140_vm0, %v3747_v39  ;;  %3201 = vmatmul.mubr.msk.f32.vlgmr.msra.gmra.mxu0 %vm140_vm0, %v3750_v40  ;;  %v2978_v39 = vld [vmem:[%s3602_s24 + $0x1] ss:$0 sm:$0xff]  ;;  %s4182_s24 = sld [smem:[#allocation19_spill]] }
 0x681   :  { %3192 = vmatprep.mubr.msk.f32.mxu1 %vm3536_vm1, %v3535_v2  ;;  %3203 = vmatprep.mubr.msk.f32.mxu0 %vm3536_vm1, %v3535_v2  ;;  %v2980_v40 = vld [vmem:[%s3607_s30 + $0x1] ss:$0 sm:$0xff]  ;;  %s3537_s30 = smov [#allocation4]  }
 0x682   :  { %3209 = vmatprep.subr.mxu1 %v3535_v2  ;;  %3222 = vmatprep.subr.mxu0 %v3535_v2  ;;  %s2897_s6 = sshll.u32 %s3537_s30, 4  ;;  %s2898_s6 = int_to_ptr.vmem [resolvable:$true] %s2897_s6 }
 0x683   :  { %3210 = vmatpush3.msra.mxu1 %v3817_v9  ;;  %3223 = vmatpush3.msra.mxu0 %v3820_v10  ;;  %s3461_s12 = scalar_lea.vmem %s2898_s6, 128  ;;  %p3466_p1 = scmp.lt.s32.totalorder %s2898_s6, %s2898_s6 }
 0x684   :  { %3193 = vmatmul.mubr.msk.f32.gmra.mxu1 %vm140_vm0, %v3759_v42  ;;  %3204 = vmatmul.mubr.msk.f32.gmra.mxu0 %vm140_vm0, %v3764_v43  ;;  %p3462_p0 = scmp.ne.s32.totalorder %s2898_s6, %s3461_s12  ;;  %p3467_p2 = scmp.lt.s32.totalorder %s3461_s12, %s3461_s12 }
 0x685   :  { %3195 = vmatprep.mubr.msk.f32.mxu1 %vm3536_vm1, %v3535_v2  ;;  %3206 = vmatprep.mubr.msk.f32.mxu0 %vm3536_vm1, %v3535_v2 }
 0x686   :  { %3211 = vmatprep.subr.mxu1 %v3535_v2  ;;  %3224 = vmatprep.subr.mxu0 %v3535_v2  ;;  %p3468_p3 = por %p3467_p2, %p3466_p1 }
 0x687   :  { %3212 = vmatpush3.msra.mxu1 %v3823_v11  ;;  %3225 = vmatpush3.msra.mxu0 %v3828_v12 }
 0x688   :  { %3196 = vmatmul.mubr.msk.f32.gmra.mxu1 %vm140_vm0, %v3777_v44  ;;  %3207 = vmatmul.mubr.msk.f32.gmra.mxu0 %vm140_vm0, %v3780_v45  ;;  %p3469_p4 = pnand %p3468_p3, %p3462_p0 }
 0x689   :  { %3213 = vmatprep.mubr.msk.f32.mxu1 %vm3536_vm1, %v3535_v2  ;;  %3226 = vmatprep.mubr.msk.f32.mxu0 %vm3536_vm1, %v3535_v2 }
 0x68a   :  { %3235 = vmatprep.subr.mxu1 %v3535_v2  ;;  %3248 = vmatprep.subr.mxu0 %v3535_v2 }
 0x740   :  { %v3933_v42 = vpop.f32.mrf.mxu1  ;;  %v3935_v43 = vpop.f32.mrf.mxu0 }
 0x741   :  { %v1268_v44 = vmul.f32 %v2978_v39, %v3933_v42  ;;  %v1300_v45 = vmul.f32 %v2980_v40, %v3935_v43 }
 0x742   :  { %v3191_v9 = vpop.f32.mrf.mxu1  ;;  %v3202_v10 = vpop.f32.mrf.mxu0 }
 0x743   :  { %v1271_v11 = vsel %vm214_vm2, %v1268_v44, 0.0  ;;  %v1303_v12 = vsel %vm214_vm2, %v1300_v45, 0.0 }
 0x744   :  { %1272 = vadd.xlane.f32.xlu0 %v1271_v11  ;;  %v3941_v19 = vpop.f32.mrf.mxu1  ;;  %1304 = vadd.xlane.f32.xlu1 %v1303_v12  ;;  %v3943_v20 = vpop.f32.mrf.mxu0 }
 0x745   :  { %v1269_v21 = vmul.f32 %v2978_v39, %v3941_v19  ;;  %v1301_v22 = vmul.f32 %v2980_v40, %v3943_v20 }
 0x746   :  { %v3194_v23 = vpop.f32.mrf.mxu1  ;;  %v3205_v24 = vpop.f32.mrf.mxu0 }
 0x747   :  { %v1274_v25 = vsel %vm214_vm2, %v1269_v21, 0.0  ;;  %v1306_v26 = vsel %vm214_vm2, %v1301_v22, 0.0 }
 0x748   :  { %1275 = vadd.xlane.f32.xlu0 %v1274_v25  ;;  %v3949_v27 = vpop.f32.mrf.mxu1  ;;  %1307 = vadd.xlane.f32.xlu1 %v1306_v26  ;;  %v3951_v28 = vpop.f32.mrf.mxu0 }
 0x749   :  { %v1270_v30 = vmul.f32 %v2978_v39, %v3949_v27  ;;  %v1302_v31 = vmul.f32 %v2980_v40, %v3951_v28 }
 0x74a   :  { %v3197_v32 = vpop.f32.mrf.mxu1  ;;  %v3208_v33 = vpop.f32.mrf.mxu0 }
 0x74b   :  { %v1277_v34 = vsel %vm214_vm2, %v1270_v30, 0.0  ;;  %v1309_v49 = vsel %vm214_vm2, %v1302_v31, 0.0 }
 0x74c   :  { %1278 = vadd.xlane.f32.xlu0 %v1277_v34  ;;  %1310 = vadd.xlane.f32.xlu1 %v1309_v49 }
 0x7cd   :  { %v1273_v48 = vpop.xlane.xlu0 %1272  ;;  %v1305_v37 = vpop.xlane.xlu1 %1304 }
 0x7ce   :  { %vm1280_vm14 = vcmp.gt.f32.partialorder %v1273_v48, 0.0  ;;  %v1283_v38 = vmul.f32 0.2, %v1273_v48  ;;  %vm1312_vm15 = vcmp.gt.f32.partialorder %v1305_v37, 0.0  ;;  %v1315_v41 = vmul.f32 0.2, %v1305_v37 }
 0x7d0   :  { %v1286_v55 = vsel %vm1280_vm14, %v1273_v48, %v1283_v38  ;;  %v1318_v56 = vsel %vm1312_vm15, %v1305_v37, %v1315_v41 }
 0x7d1   :  { %v1289_v63 = vmul.f32 0.002, %v1286_v55  ;;  %v1321_v0 = vmul.f32 0.002, %v1318_v56  ;;  %v1276_v47 = vpop.xlane.xlu0 %1275  ;;  %v1308_v51 = vpop.xlane.xlu1 %1307 }
 0x7d2   :  { %vm1281_vm3 = vcmp.gt.f32.partialorder %v1276_v47, 0.0  ;;  %v1284_v52 = vmul.f32 0.2, %v1276_v47  ;;  %vm1313_vm4 = vcmp.gt.f32.partialorder %v1308_v51, 0.0  ;;  %v1316_v53 = vmul.f32 0.2, %v1308_v51 }
 0x7d3   :  { %v1324_v54 = vmax.f32 %v1289_v63, %v1321_v0 }
 0x7d4   :  { %v1287_v58 = vsel %vm1281_vm3, %v1276_v47, %v1284_v52  ;;  %v1319_v59 = vsel %vm1313_vm4, %v1308_v51, %v1316_v53 }
 0x7d5   :  { %v1327_v60 = vsub.f32 %v1289_v63, %v1324_v54  ;;  %v1342_v61 = vsub.f32 %v1321_v0, %v1324_v54  ;;  %v1290_v62 = vmul.f32 0.002, %v1287_v58  ;;  %v1322_v1 = vmul.f32 0.002, %v1319_v59  ;;  %v1279_v3 = vpop.xlane.xlu0 %1278  ;;  %v1311_v4 = vpop.xlane.xlu1 %1310 }
 0x7d6   :  { %vm1282_vm5 = vcmp.gt.f32.partialorder %v1279_v3, 0.0  ;;  %v1285_v5 = vmul.f32 0.2, %v1279_v3  ;;  %vm1314_vm6 = vcmp.gt.f32.partialorder %v1311_v4, 0.0  ;;  %v1317_v6 = vmul.f32 0.2, %v1311_v4 }
 0x7d7   :  { %v1330_v7 = vmul.f32 1.442695, %v1327_v60  ;;  %v1345_v13 = vmul.f32 1.442695, %v1342_v61  ;;  %v1325_v14 = vmax.f32 %v1290_v62, %v1322_v1 }
 0x7d8   :  { %v1288_v15 = vsel %vm1282_vm5, %v1279_v3, %v1285_v5  ;;  %v1320_v17 = vsel %vm1314_vm6, %v1311_v4, %v1317_v6 }
 0x7d9   :  { %3411 = vpow2.f32 %v1330_v7  ;;  %v1328_v18 = vsub.f32 %v1290_v62, %v1325_v14  ;;  %v1343_v39 = vsub.f32 %v1322_v1, %v1325_v14  ;;  %v1291_v40 = vmul.f32 0.002, %v1288_v15  ;;  %v1650_v14 = vld [vmem:[%s4171_s5] sm:$0xff] }
 0x7da   :  { %3413 = vpow2.f32 %v1345_v13  ;;  %v1323_v44 = vmul.f32 0.002, %v1320_v17 }
 0x7db   :  { %v1332_v45 = vmul.f32 1.442695, %v1328_v18  ;;  %v1347_v9 = vmul.f32 1.442695, %v1343_v39 }
 0x7dc   :  { %v1326_v10 = vmax.f32 %v1291_v40, %v1323_v44 }
 0x7dd   :  { %3415 = vpow2.f32 %v1332_v45 }
 0x7de   :  { %3417 = vpow2.f32 %v1347_v9  ;;  %v1329_v11 = vsub.f32 %v1291_v40, %v1326_v10  ;;  %v1344_v12 = vsub.f32 %v1323_v44, %v1326_v10 }
 0x7e0   :  { %v1334_v21 = vmul.f32 1.442695, %v1329_v11  ;;  %v1349_v22 = vmul.f32 1.442695, %v1344_v12  ;;  %v1569_v11 = vrot.slane %v3895_v16, 4 }
 0x7e2   :  { %3419 = vpow2.f32 %v1334_v21 }
 0x7e3   :  { %3421 = vpow2.f32 %v1349_v22 }
 0x7e6   :  { %v3412_v23 = vpop.eup %3411 }
 0x7e7   :  { %v3414_v24 = vpop.eup %3413  ;;  %v1336_v25 = vmul.f32 1.442695, %v3412_v23 }
 0x7e8   :  { %v1351_v26 = vmul.f32 1.442695, %v3414_v24 }
 0x7e9   :  { %3423 = vpow2.f32 %v1336_v25 }
 0x7ea   :  { %v3416_v30 = vpop.eup %3415  ;;  %3425 = vpow2.f32 %v1351_v26  ;;  %v1570_v26 = vadd.f32 %v1569_v11, %v3895_v16 }
 0x7eb   :  { %v3418_v31 = vpop.eup %3417  ;;  %v1338_v32 = vmul.f32 1.442695, %v3416_v30 }
 0x7ec   :  { %v1353_v33 = vmul.f32 1.442695, %v3418_v31 }
 0x7ed   :  { %3427 = vpow2.f32 %v1338_v32 }
 0x7ee   :  { %3429 = vpow2.f32 %v1353_v33 }
 0x7ef   :  { %v3420_v34 = vpop.eup %3419 }
 0x7f0   :  { %v3422_v49 = vpop.eup %3421  ;;  %v1340_v48 = vmul.f32 1.442695, %v3420_v34 }
 0x7f1   :  { %v1355_v37 = vmul.f32 1.442695, %v3422_v49 }
 0x7f2   :  { %3431 = vpow2.f32 %v1340_v48  ;;  %v1571_v48 = vrot.slane %v1570_v26, 2 }
 0x7f3   :  { %3433 = vpow2.f32 %v1355_v37 }
 0x7f6   :  { %v3424_v38 = vpop.eup %3423 }
 0x7f7   :  { %v3426_v41 = vpop.eup %3425 }
 0x7f8   :  { %v1357_v55 = vadd.f32 %v3426_v41, %v3424_v38 }
 0x7fa   :  { %v3428_v56 = vpop.eup %3427  ;;  %3435 = vrcp.f32 %v1357_v55 }
 0x7fb   :  { %v3430_v63 = vpop.eup %3429 }
 0x7fc   :  { %v1358_v0 = vadd.f32 %v3430_v63, %v3428_v56 }
 0x7fe   :  { %3437 = vrcp.f32 %v1358_v0 }
 0x7ff   :  { %v3432_v47 = vpop.eup %3431 }
 0x800   :  { %v3434_v51 = vpop.eup %3433 }
 0x801   :  { %v1359_v52 = vadd.f32 %v3434_v51, %v3432_v47 }
 0x803   :  { %3439 = vrcp.f32 %v1359_v52 }
 0x807   :  { %v3436_v53 = vpop.eup %3435 }
 0x808   :  { %v1366_v54 = vmul.f32 %v3436_v53, %v3426_v41  ;;  %v3957_v58 = vmul.f32 %v3436_v53, %v3424_v38  ;;  %v1572_v41 = vadd.f32 %v1571_v48, %v1570_v26 }
 0x80a   :  { %v1372_v59 = vmul.f32 %v1366_v54, %v3935_v43  ;;  %v1369_v60 = vmul.f32 %v3957_v58, %v3933_v42  ;;  %v1557_v61 = vsel %vm1556_vm7, %v3836_v29, %v3957_v58 }
 0x80b   :  { %v3438_v62 = vpop.eup %3437  ;;  %1561 = vst.msk [vmem:[%s3697_s17] sm:$0xff] %vm1560_vm8, %v1557_v61 }
 0x80c   :  { %3214 = vmatmul.mubr.msk.f32.vlgmr.msra.gmra.mxu1 %vm214_vm2, %v1372_v59  ;;  %3227 = vmatmul.mubr.msk.f32.vlgmr.msra.gmra.mxu0 %vm214_vm2, %v1369_v60  ;;  %v1367_v1 = vmul.f32 %v3438_v62, %v3430_v63  ;;  %v3969_v3 = vmul.f32 %v3438_v62, %v3428_v56  ;;  %v1573_v63 = vrot.slane %v1572_v41, 1 }
 0x80d   :  { %3216 = vmatprep.mubr.msk.f32.mxu1 %vm3536_vm1, %v3535_v2  ;;  %3229 = vmatprep.mubr.msk.f32.mxu0 %vm3536_vm1, %v3535_v2 }
 0x80e   :  { %v1373_v42 = vmul.f32 %v1367_v1, %v3943_v20  ;;  %v1370_v43 = vmul.f32 %v3969_v3, %v3941_v19  ;;  %v1558_v4 = vsel %vm1556_vm7, %v3844_v36, %v3969_v3 }
 0x80f   :  { %1562 = vst.msk [vmem:[%s3697_s17 + $0x8] sm:$0xff] %vm1560_vm8, %v1558_v4 }
 0x810   :  { %v3440_v5 = vpop.eup %3439  ;;  %3217 = vmatmul.mubr.msk.f32.gmra.mxu1 %vm214_vm2, %v1373_v42  ;;  %3230 = vmatmul.mubr.msk.f32.gmra.mxu0 %vm214_vm2, %v1370_v43 }
 0x811   :  { %3219 = vmatprep.mubr.msk.f32.mxu1 %vm3536_vm1, %v3535_v2  ;;  %3232 = vmatprep.mubr.msk.f32.mxu0 %vm3536_vm1, %v3535_v2  ;;  %v1368_v19 = vmul.f32 %v3440_v5, %v3434_v51  ;;  %v3989_v20 = vmul.f32 %v3440_v5, %v3432_v47  ;;  %v1574_v51 = vadd.f32 %v1573_v63, %v1572_v41 }
 0x813   :  { %v1374_v6 = vmul.f32 %v1368_v19, %v3951_v28  ;;  %v1371_v7 = vmul.f32 %v3989_v20, %v3949_v27  ;;  %v1559_v13 = vsel %vm1556_vm7, %v3857_v46, %v3989_v20  ;;  %v1651_v28 = vld [vmem:[%s4171_s5 + $0x8] sm:$0xff]  ;;  %vm1926_vm7 = vcmask 195584  }
 0x814   :  { %1563 = vst.msk [vmem:[%s3697_s17 + $0x10] sm:$0xff] %vm1560_vm8, %v1559_v13  ;;  %3236 = vmatpush3.msra.mxu1 %v1651_v28  ;;  %3249 = vmatpush3.msra.mxu0 %v1651_v28  ;;  %s4174_s17 = sld [smem:[#allocation8_spill]] }
 0x815   :  { %3220 = vmatmul.mubr.msk.f32.gmra.mxu1 %vm214_vm2, %v1374_v6  ;;  %3233 = vmatmul.mubr.msk.f32.gmra.mxu0 %vm214_vm2, %v1371_v7 }
 0x816   :  { %3239 = vmatprep.mubr.msk.f32.mxu1 %vm3536_vm1, %v3535_v2  ;;  %3252 = vmatprep.mubr.msk.f32.mxu0 %vm3536_vm1, %v3535_v2 }
 0x817   :  { %3237 = vmatprep.subr.mxu1 %v3535_v2  ;;  %3250 = vmatprep.subr.mxu0 %v3535_v2 }
 0x818   :  { %3238 = vmatpush3.msra.mxu1 %v1650_v14  ;;  %3251 = vmatpush3.msra.mxu0 %v1650_v14 }
 0x819   :  { %3261 = vmatprep.subr.mxu1 %v3535_v2  ;;  %3270 = vmatprep.subr.mxu0 %v3535_v2 }
 0x8cc   :  { %v1450_v27 = vpop.f32.mrf.mxu1  ;;  %v1539_v15 = vpop.f32.mrf.mxu0 }
 0x8cd   :  { %v1540_v39 = vadd.f32 %v1539_v15, %v1450_v27 }
 0x8ce   :  { %v3215_v17 = vpop.f32.mrf.mxu1  ;;  %v3228_v18 = vpop.f32.mrf.mxu0 }
 0x8cf   :  { %v1553_v21 = vadd.f32 %v3878_v50, %v1540_v39 }
 0x8d0   :  { %v1455_v40 = vpop.f32.mrf.mxu1  ;;  %v1544_v44 = vpop.f32.mrf.mxu0 }
 0x8d1   :  { %v1545_v45 = vadd.f32 %v1544_v44, %v1455_v40  ;;  %v1575_v32 = vsel %vm214_vm2, %v1553_v21, 0.0 }
 0x8d2   :  { %v3218_v9 = vpop.f32.mrf.mxu1  ;;  %v3231_v10 = vpop.f32.mrf.mxu0 }
 0x8d3   :  { %v1554_v12 = vadd.f32 %v3878_v50, %v1545_v45 }
 0x8d5   :  { %v1460_v22 = vpop.f32.mrf.mxu1  ;;  %v1549_v23 = vpop.f32.mrf.mxu0  ;;  %v1576_v24 = vsel %vm214_vm2, %v1554_v12, 0.0 }
 0x8d6   :  { %v1550_v25 = vadd.f32 %v1549_v23, %v1460_v22  ;;  %v1577_v34 = vadd.f32 %v1576_v24, %v1575_v32 }
 0x8d7   :  { %v3221_v30 = vpop.f32.mrf.mxu1  ;;  %v3234_v31 = vpop.f32.mrf.mxu0 }
 0x8d8   :  { %v1555_v33 = vadd.f32 %v3878_v50, %v1550_v25 }
 0x8da   :  { %v1578_v49 = vsel %vm214_vm2, %v1555_v33, 0.0 }
 0x8db   :  { %v1579_v37 = vadd.f32 %v1578_v49, %v1577_v34 }
 0x8dd   :  { %v1580_v38 = vrot.slane %v1579_v37, 4 }
 0x8df   :  { %v1581_v55 = vadd.f32 %v1580_v38, %v1579_v37 }
 0x8e1   :  { %v1582_v56 = vrot.slane %v1581_v55, 2 }
 0x8e3   :  { %v1583_v0 = vadd.f32 %v1582_v56, %v1581_v55 }
 0x8e5   :  { %v1584_v47 = vrot.slane %v1583_v0, 1 }
 0x8e7   :  { %v1585_v16 = vadd.f32 %v1584_v47, %v1583_v0 }
 0x8e9   :  { %v1586_v52 = vadd.f32 %v1585_v16, %v1574_v51 }
 0x8eb   :  { %v1587_v53 = vmul.f32 0.020833334, %v1586_v52 }
 0x8ed   :  { %v1588_v54 = vsub.f32 %v3881_v57, %v1587_v53  ;;  %v1589_v50 = vsub.f32 %v3884_v35, %v1587_v53  ;;  %v1590_v59 = vsub.f32 %v3891_v8, %v1587_v53  ;;  %v1591_v60 = vsub.f32 %v1553_v21, %v1587_v53 }
 0x8ee   :  { %v1592_v61 = vsub.f32 %v1554_v12, %v1587_v53  ;;  %v1593_v62 = vsub.f32 %v1555_v33, %v1587_v53  ;;  %v4047_v53 = vld [vmem:[%s4172_s9 + $0x8] sm:$0xff] }
 0x8ef   :  { %v1594_v1 = vmul.f32 %v1588_v54, %v1588_v54  ;;  %v1595_v42 = vmul.f32 %v1589_v50, %v1589_v50  ;;  %v1596_v43 = vmul.f32 %v1590_v59, %v1590_v59  ;;  %v1608_v4 = vmul.f32 %v1591_v60, %v1591_v60 }
 0x8f0   :  { %v1609_v5 = vmul.f32 %v1592_v61, %v1592_v61  ;;  %v1610_v19 = vmul.f32 %v1593_v62, %v1593_v62 }
 0x8f1   :  { %v1597_v6 = vsel %vm214_vm2, %v1594_v1, 0.0  ;;  %v1598_v7 = vsel %vm214_vm2, %v1595_v42, 0.0  ;;  %v1611_v13 = vsel %vm214_vm2, %v1608_v4, 0.0  ;;  %v1600_v8 = vsel %vm214_vm2, %v1596_v43, 0.0 }
 0x8f2   :  { %v1599_v57 = vadd.f32 %v1598_v7, %v1597_v6  ;;  %v1612_v35 = vsel %vm214_vm2, %v1609_v5, 0.0  ;;  %v1614_v27 = vsel %vm214_vm2, %v1610_v19, 0.0 }
 0x8f3   :  { %v1613_v28 = vadd.f32 %v1612_v35, %v1611_v13 }
 0x8f4   :  { %v1601_v14 = vadd.f32 %v1600_v8, %v1599_v57 }
 0x8f5   :  { %v1615_v15 = vadd.f32 %v1614_v27, %v1613_v28 }
 0x8f6   :  { %v1602_v17 = vrot.slane %v1601_v14, 4 }
 0x8f7   :  { %v1616_v18 = vrot.slane %v1615_v15, 4 }
 0x8f8   :  { %v1603_v39 = vadd.f32 %v1602_v17, %v1601_v14 }
 0x8f9   :  { %v1617_v40 = vadd.f32 %v1616_v18, %v1615_v15 }
 0x8fa   :  { %v1604_v44 = vrot.slane %v1603_v39, 2 }
 0x8fb   :  { %v1618_v45 = vrot.slane %v1617_v40, 2 }
 0x8fc   :  { %v1605_v9 = vadd.f32 %v1604_v44, %v1603_v39 }
 0x8fd   :  { %v1619_v10 = vadd.f32 %v1618_v45, %v1617_v40 }
 0x8fe   :  { %v1606_v11 = vrot.slane %v1605_v9, 1 }
 0x8ff   :  { %v1620_v12 = vrot.slane %v1619_v10, 1 }
 0x900   :  { %v1607_v21 = vadd.f32 %v1606_v11, %v1605_v9 }
 0x901   :  { %v1621_v22 = vadd.f32 %v1620_v12, %v1619_v10 }
 0x903   :  { %v1622_v23 = vadd.f32 %v1621_v22, %v1607_v21 }
 0x905   :  { %v1623_v24 = vmul.f32 0.020833334, %v1622_v23 }
 0x907   :  { %v1624_v25 = vadd.f32 1e-05, %v1623_v24 }
 0x909   :  { %3441 = vrsqrt.f32 %v1624_v25 }
 0x916   :  { %v3442_v26 = vpop.eup %3441 }
 0x917   :  { %v1631_v30 = vmul.f32 %v3442_v26, %v1593_v62  ;;  %v1626_v31 = vmul.f32 %v3442_v26, %v1588_v54  ;;  %v1629_v32 = vmul.f32 %v3442_v26, %v1591_v60  ;;  %v1627_v33 = vmul.f32 %v3442_v26, %v1589_v50 }
 0x918   :  { %v1630_v34 = vmul.f32 %v3442_v26, %v1592_v61  ;;  %v1628_v49 = vmul.f32 %v3442_v26, %v1590_v59  ;;  %v2987_v59 = vld [vmem:[%s4173_s13] ss:$0 sm:$0xff] }
 0x919   :  { %vm1632_vm9 = vcmp.gt.f32.partialorder %v1626_v31, 0.0  ;;  %v1635_v48 = vmul.f32 0.01, %v1626_v31  ;;  %vm1641_vm10 = vcmp.gt.f32.partialorder %v1629_v32, 0.0  ;;  %v1644_v37 = vmul.f32 0.01, %v1629_v32 }
 0x91a   :  { %v1636_v55 = vmul.f32 0.01, %v1627_v33  ;;  %v1645_v56 = vmul.f32 0.01, %v1630_v34  ;;  %vm1633_vm11 = vcmp.gt.f32.partialorder %v1627_v33, 0.0  ;;  %vm1642_vm12 = vcmp.gt.f32.partialorder %v1630_v34, 0.0 }
 0x91b   :  { %v1638_v38 = vsel %vm1632_vm9, %v1626_v31, %v1635_v48  ;;  %v1647_v41 = vsel %vm1641_vm10, %v1629_v32, %v1644_v37  ;;  %v1637_v47 = vmul.f32 0.01, %v1628_v49  ;;  %v1646_v51 = vmul.f32 0.01, %v1631_v30 }
 0x91c   :  { %3240 = vmatmul.mubr.msk.f32.vlgmr.msra.gmra.mxu1 %vm214_vm2, %v1638_v38  ;;  %3253 = vmatmul.mubr.msk.f32.vlgmr.msra.gmra.mxu0 %vm214_vm2, %v1647_v41  ;;  %v1639_v63 = vsel %vm1633_vm11, %v1627_v33, %v1636_v55  ;;  %v1648_v0 = vsel %vm1642_vm12, %v1630_v34, %v1645_v56  ;;  %vm1634_vm13 = vcmp.gt.f32.partialorder %v1628_v49, 0.0  ;;  %vm1643_vm14 = vcmp.gt.f32.partialorder %v1631_v30, 0.0 }
 0x91d   :  { %3242 = vmatprep.mubr.msk.f32.mxu1 %vm3536_vm1, %v3535_v2  ;;  %3255 = vmatprep.mubr.msk.f32.mxu0 %vm3536_vm1, %v3535_v2  ;;  %v1640_v16 = vsel %vm1634_vm13, %v1628_v49, %v1637_v47  ;;  %v1649_v52 = vsel %vm1643_vm14, %v1631_v30, %v1646_v51 }
 0x91e   :  { %3271 = vmatpush3.msra.mxu0 %v4047_v53 }
 0x91f   :  { %3272 = vmatprep.subr.mxu0 %v3535_v2 }
 0x920   :  { %3243 = vmatmul.mubr.msk.f32.gmra.mxu1 %vm214_vm2, %v1639_v63  ;;  %3256 = vmatmul.mubr.msk.f32.gmra.mxu0 %vm214_vm2, %v1648_v0 }
 0x921   :  { %3245 = vmatprep.mubr.msk.f32.mxu1 %vm3536_vm1, %v3535_v2  ;;  %3258 = vmatprep.mubr.msk.f32.mxu0 %vm3536_vm1, %v3535_v2 }
 0x924   :  { %3246 = vmatmul.mubr.msk.f32.gmra.mxu1 %vm214_vm2, %v1640_v16  ;;  %3259 = vmatmul.mubr.msk.f32.gmra.mxu0 %vm214_vm2, %v1649_v52 }
 0x925   :  { %3267 = vmatprep.mubr.msk.f32.mxu1 %vm3536_vm1, %v3535_v2  ;;  %3274 = vmatprep.mubr.msk.f32.mxu0 %vm3536_vm1, %v3535_v2 }
 0x9dc   :  { %v1734_v54 = vpop.f32.mrf.mxu1  ;;  %v1823_v50 = vpop.f32.mrf.mxu0 }
 0x9dd   :  { %v1735_v42 = vadd.f32 %v2987_v59, %v1734_v54  ;;  %v1824_v43 = vadd.f32 %v2987_v59, %v1823_v50 }
 0x9de   :  { %v3241_v60 = vpop.f32.mrf.mxu1  ;;  %v3254_v61 = vpop.f32.mrf.mxu0 }
 0x9df   :  { %v1837_v8 = vsel %vm214_vm2, %v1735_v42, 0.0  ;;  %v1848_v28 = vsel %vm214_vm2, %v1824_v43, 0.0 }
 0x9e0   :  { %v1739_v62 = vpop.f32.mrf.mxu1  ;;  %v1828_v1 = vpop.f32.mrf.mxu0 }
 0x9e1   :  { %v1740_v4 = vadd.f32 %v2987_v59, %v1739_v62  ;;  %v1829_v5 = vadd.f32 %v2987_v59, %v1828_v1 }
 0x9e2   :  { %v3244_v19 = vpop.f32.mrf.mxu1  ;;  %v3257_v6 = vpop.f32.mrf.mxu0 }
 0x9e3   :  { %v1838_v7 = vsel %vm214_vm2, %v1740_v4, 0.0  ;;  %v1849_v13 = vsel %vm214_vm2, %v1829_v5, 0.0 }
 0x9e4   :  { %v1744_v57 = vpop.f32.mrf.mxu1  ;;  %v1833_v35 = vpop.f32.mrf.mxu0  ;;  %v1839_v15 = vadd.f32 %v1838_v7, %v1837_v8  ;;  %v1850_v17 = vadd.f32 %v1849_v13, %v1848_v28 }
 0x9e5   :  { %v1745_v14 = vadd.f32 %v2987_v59, %v1744_v57  ;;  %v1834_v27 = vadd.f32 %v2987_v59, %v1833_v35 }
 0x9e6   :  { %v3247_v18 = vpop.f32.mrf.mxu1  ;;  %v3260_v39 = vpop.f32.mrf.mxu0 }
 0x9e7   :  { %v1840_v40 = vsel %vm214_vm2, %v1745_v14, 0.0  ;;  %v1851_v44 = vsel %vm214_vm2, %v1834_v27, 0.0 }
 0x9e8   :  { %v1841_v45 = vadd.f32 %v1840_v40, %v1839_v15  ;;  %v1852_v9 = vadd.f32 %v1851_v44, %v1850_v17 }
 0x9ea   :  { %v1842_v10 = vrot.slane %v1841_v45, 4  ;;  %v1853_v11 = vrot.slane %v1852_v9, 4 }
 0x9ec   :  { %v1843_v12 = vadd.f32 %v1842_v10, %v1841_v45  ;;  %v1854_v21 = vadd.f32 %v1853_v11, %v1852_v9 }
 0x9ee   :  { %v1844_v22 = vrot.slane %v1843_v12, 2  ;;  %v1855_v23 = vrot.slane %v1854_v21, 2 }
 0x9f0   :  { %v1845_v24 = vadd.f32 %v1844_v22, %v1843_v12  ;;  %v1856_v25 = vadd.f32 %v1855_v23, %v1854_v21 }
 0x9f2   :  { %v1846_v26 = vrot.slane %v1845_v24, 1  ;;  %v1857_v30 = vrot.slane %v1856_v25, 1 }
 0x9f4   :  { %v1847_v31 = vadd.f32 %v1846_v26, %v1845_v24  ;;  %v1858_v32 = vadd.f32 %v1857_v30, %v1856_v25 }
 0x9f6   :  { %v1859_v33 = vadd.f32 %v1858_v32, %v1847_v31 }
 0x9f8   :  { %v1860_v34 = vmul.f32 0.020833334, %v1859_v33 }
 0x9fa   :  { %v1861_v49 = vsub.f32 %v1735_v42, %v1860_v34  ;;  %v1862_v48 = vsub.f32 %v1740_v4, %v1860_v34  ;;  %v1863_v37 = vsub.f32 %v1745_v14, %v1860_v34  ;;  %v1864_v38 = vsub.f32 %v1824_v43, %v1860_v34 }
 0x9fb   :  { %v1865_v41 = vsub.f32 %v1829_v5, %v1860_v34  ;;  %v1866_v55 = vsub.f32 %v1834_v27, %v1860_v34 }
 0x9fc   :  { %v1867_v56 = vmul.f32 %v1861_v49, %v1861_v49  ;;  %v1868_v63 = vmul.f32 %v1862_v48, %v1862_v48  ;;  %v1869_v0 = vmul.f32 %v1863_v37, %v1863_v37  ;;  %v1881_v47 = vmul.f32 %v1864_v38, %v1864_v38 }
 0x9fd   :  { %v1882_v51 = vmul.f32 %v1865_v41, %v1865_v41  ;;  %v1883_v16 = vmul.f32 %v1866_v55, %v1866_v55 }
 0x9fe   :  { %v1870_v52 = vsel %vm214_vm2, %v1867_v56, 0.0  ;;  %v1871_v54 = vsel %vm214_vm2, %v1868_v63, 0.0  ;;  %v1884_v50 = vsel %vm214_vm2, %v1881_v47, 0.0  ;;  %v1873_v61 = vsel %vm214_vm2, %v1869_v0, 0.0  ;;  %v2275_v56 = vld [vmem:[%s4175_s21 + $0x8] sm:$0xff]  ;;  %v2274_v63 = vld [vmem:[%s4175_s21] sm:$0xff] }
 0x9ff   :  { %v1872_v59 = vadd.f32 %v1871_v54, %v1870_v52  ;;  %v1885_v60 = vsel %vm214_vm2, %v1882_v51, 0.0  ;;  %v1887_v42 = vsel %vm214_vm2, %v1883_v16, 0.0 }
 0xa00   :  { %v1886_v62 = vadd.f32 %v1885_v60, %v1884_v50 }
 0xa01   :  { %v1874_v1 = vadd.f32 %v1873_v61, %v1872_v59 }
 0xa02   :  { %v1888_v43 = vadd.f32 %v1887_v42, %v1886_v62 }
 0xa03   :  { %v1875_v4 = vrot.slane %v1874_v1, 4 }
 0xa04   :  { %v1889_v5 = vrot.slane %v1888_v43, 4 }
 0xa05   :  { %v1876_v19 = vadd.f32 %v1875_v4, %v1874_v1 }
 0xa06   :  { %v1890_v6 = vadd.f32 %v1889_v5, %v1888_v43 }
 0xa07   :  { %v1877_v7 = vrot.slane %v1876_v19, 2 }
 0xa08   :  { %v1891_v13 = vrot.slane %v1890_v6, 2 }
 0xa09   :  { %v1878_v57 = vadd.f32 %v1877_v7, %v1876_v19 }
 0xa0a   :  { %v1892_v35 = vadd.f32 %v1891_v13, %v1890_v6 }
 0xa0b   :  { %v1879_v8 = vrot.slane %v1878_v57, 1 }
 0xa0c   :  { %v1893_v28 = vrot.slane %v1892_v35, 1 }
 0xa0d   :  { %v1880_v14 = vadd.f32 %v1879_v8, %v1878_v57 }
 0xa0e   :  { %v1894_v27 = vadd.f32 %v1893_v28, %v1892_v35 }
 0xa10   :  { %v1895_v15 = vadd.f32 %v1894_v27, %v1880_v14 }
 0xa12   :  { %v1896_v17 = vmul.f32 0.020833334, %v1895_v15 }
 0xa14   :  { %v1897_v18 = vadd.f32 1e-05, %v1896_v17 }
 0xa16   :  { %3443 = vrsqrt.f32 %v1897_v18 }
 0xa23   :  { %v3444_v39 = vpop.eup %3443 }
 0xa24   :  { %v1904_v40 = vmul.f32 %v3444_v39, %v1866_v55  ;;  %v1901_v44 = vmul.f32 %v3444_v39, %v1863_v37  ;;  %v1900_v45 = vmul.f32 %v3444_v39, %v1862_v48  ;;  %v1899_v9 = vmul.f32 %v3444_v39, %v1861_v49  ;;  %v462_v48 = vld [vmem:[%s4174_s17] sm:$0xff] }
 0xa25   :  { %v1903_v11 = vmul.f32 %v3444_v39, %v1865_v41  ;;  %v1902_v24 = vmul.f32 %v3444_v39, %v1864_v38 }
 0xa26   :  { %vm1907_vm15 = vcmp.gt.f32.partialorder %v1901_v44, 0.0  ;;  %v1910_v10 = vmul.f32 0.2, %v1901_v44  ;;  %vm1906_vm3 = vcmp.gt.f32.partialorder %v1900_v45, 0.0  ;;  %v1909_v12 = vmul.f32 0.2, %v1900_v45 }
 0xa27   :  { %vm1905_vm4 = vcmp.gt.f32.partialorder %v1899_v9, 0.0  ;;  %v1908_v21 = vmul.f32 0.2, %v1899_v9  ;;  %v1919_v22 = vmul.f32 0.2, %v1904_v40  ;;  %vm1916_vm5 = vcmp.gt.f32.partialorder %v1904_v40, 0.0 }
 0xa28   :  { %v1913_v23 = vsel %vm1907_vm15, %v1901_v44, %v1910_v10  ;;  %v1912_v26 = vsel %vm1906_vm3, %v1900_v45, %v1909_v12  ;;  %v1918_v31 = vmul.f32 0.2, %v1903_v11  ;;  %vm1915_vm6 = vcmp.gt.f32.partialorder %v1903_v11, 0.0 }
 0xa29   :  { %v1925_v25 = vmul.f32 %v1913_v23, %v3857_v46  ;;  %v1911_v30 = vsel %vm1905_vm4, %v1899_v9, %v1908_v21  ;;  %v1924_v32 = vmul.f32 %v1912_v26, %v3844_v36  ;;  %v1922_v33 = vsel %vm1916_vm5, %v1904_v40, %v1919_v22 }
 0xa2a   :  { %v1917_v34 = vmul.f32 0.2, %v1902_v24  ;;  %v1923_v49 = vmul.f32 %v1911_v30, %v3836_v29  ;;  %vm1914_vm8 = vcmp.gt.f32.partialorder %v1902_v24, 0.0  ;;  %v1921_v46 = vsel %vm1915_vm6, %v1903_v11, %v1918_v31 }
 0xa2b   :  { %3262 = vmatpush3.msra.mxu1 %v1925_v25  ;;  %v2084_v37 = vmul.f32 %v1922_v33, %v3989_v20  ;;  %v2083_v38 = vmul.f32 %v1921_v46, %v3969_v3  ;;  %v2000_v3 = vld [vmem:[%s4172_s9] sm:$0xff]  ;;  %v2477_v46 = vld [vmem:[%s4177_s29 + $0x8] sm:$0xff] }
 0xa2c   :  { %3263 = vmatprep.subr.mxu1 %v3535_v2  ;;  %v1920_v36 = vsel %vm1914_vm8, %v1902_v24, %v1917_v34  ;;  %3273 = vmatpush3.msra.mxu0 %v2000_v3 }
 0xa2d   :  { %3264 = vmatpush3.msra.mxu1 %v1924_v32  ;;  %v2082_v29 = vmul.f32 %v1920_v36, %v3957_v58  ;;  %3286 = vmatprep.subr.mxu0 %v3535_v2  ;;  %v2476_v36 = vld [vmem:[%s4177_s29] sm:$0xff] }
 0xa2e   :  { %3265 = vmatprep.subr.mxu1 %v3535_v2 }
 0xa2f   :  { %3266 = vmatpush3.msra.mxu1 %v1923_v49 }
 0xa30   :  { %3277 = vmatprep.subr.mxu1 %v3535_v2  ;;  %3268 = vmatmul.mubr.msk.f32.vlgmr.msra.gmra.mxu1 %vm1926_vm7, %v462_v48 }
 0xa31   :  { %3278 = vmatpush3.msra.mxu1 %v2084_v37  ;;  %3283 = vmatprep.mubr.msk.f32.mxu1 %vm3536_vm1, %v3535_v2  ;;  %v3005_v37 = vld [vmem:[%s4177_s29 + $0x18] sm:$0xff] }
 0xa32   :  { %3279 = vmatprep.subr.mxu1 %v3535_v2 }
 0xa33   :  { %3280 = vmatpush3.msra.mxu1 %v2083_v38  ;;  %v3004_v38 = vld [vmem:[%s4177_s29 + $0x10] sm:$0xff] }
 0xa34   :  { %3281 = vmatprep.subr.mxu1 %v3535_v2 }
 0xa35   :  { %3282 = vmatpush3.msra.mxu1 %v2082_v29  ;;  %v2999_v29 = vld [vmem:[%s4178_s3] ss:$0 sm:$0xff] }
 0xa36   :  { %3284 = vmatmul.mubr.msk.f32.vlgmr.msra.gmra.mxu1 %vm1926_vm7, %v462_v48  ;;  %3300 = vmatprep.subr.mxu1 %v3535_v2 }
 0xa37   :  { %3304 = vmatprep.mubr.msk.f32.mxu1 %vm3536_vm1, %v3535_v2  ;;  %3301 = vmatpush3.msra.mxu1 %v2275_v56 }
 0xa38   :  { %3302 = vmatprep.subr.mxu1 %v3535_v2 }
 0xa39   :  { %3303 = vmatpush3.msra.mxu1 %v2274_v63 }
 0xa3a   :  { %3314 = vmatprep.subr.mxu1 %v3535_v2 }
 0xaf0   :  { %v1996_v20 = vpop.f32.mrf.mxu1 }
 0xaf1   :  { %3275 = vmatmul.mubr.msk.f32.vlgmr.msra.gmra.mxu0 %vm214_vm2, %v1996_v20 }
 0xaf2   :  { %v3269_v58 = vpop.f32.mrf.mxu1  ;;  %3287 = vmatpush3.msra.mxu0 %v4047_v53  ;;  %3290 = vmatprep.mubr.msk.f32.mxu0 %vm3536_vm1, %v3535_v2  ;;  %v2995_v53 = vld [vmem:[%s4176_s25] ss:$0 sm:$0xff] }
 0xaf3   :  { %3288 = vmatprep.subr.mxu0 %v3535_v2 }
 0xaf4   :  { %3289 = vmatpush3.msra.mxu0 %v2000_v3 }
 0xaf5   :  { %3293 = vmatprep.subr.mxu0 %v3535_v2 }
 0xaf6   :  { %v2151_v41 = vpop.f32.mrf.mxu1 }
 0xaf7   :  { %3291 = vmatmul.mubr.msk.f32.vlgmr.msra.gmra.mxu0 %vm214_vm2, %v2151_v41 }
 0xaf8   :  { %v3285_v55 = vpop.f32.mrf.mxu1  ;;  %3297 = vmatprep.mubr.msk.f32.mxu0 %vm3536_vm1, %v3535_v2  ;;  %3294 = vmatpush3.msra.mxu0 %v2275_v56 }
 0xaf9   :  { %3295 = vmatprep.subr.mxu0 %v3535_v2 }
 0xafa   :  { %3296 = vmatpush3.msra.mxu0 %v2274_v63 }
 0xafb   :  { %3307 = vmatprep.subr.mxu0 %v3535_v2 }
 0xbb1   :  { %v2078_v0 = vpop.f32.mrf.mxu0 }
 0xbb2   :  { %v2079_v47 = vadd.f32 %v2995_v53, %v2078_v0 }
 0xbb3   :  { %v3276_v51 = vpop.f32.mrf.mxu0 }
 0xbb4   :  { %v2228_v16 = vsel %vm214_vm2, %v2079_v47, 0.0 }
 0xbb5   :  { %v2229_v52 = vrot.slane %v2228_v16, 4 }
 0xbb7   :  { %v2230_v54 = vadd.f32 %v2229_v52, %v2228_v16  ;;  %v2224_v50 = vpop.f32.mrf.mxu0 }
 0xbb8   :  { %v2225_v59 = vadd.f32 %v2995_v53, %v2224_v50 }
 0xbb9   :  { %v2231_v60 = vrot.slane %v2230_v54, 2  ;;  %v3292_v61 = vpop.f32.mrf.mxu0 }
 0xbba   :  { %v2235_v62 = vsel %vm214_vm2, %v2225_v59, 0.0 }
 0xbbb   :  { %v2236_v1 = vrot.slane %v2235_v62, 4  ;;  %v2232_v42 = vadd.f32 %v2231_v60, %v2230_v54 }
 0xbbd   :  { %v2237_v43 = vadd.f32 %v2236_v1, %v2235_v62  ;;  %v2233_v5 = vrot.slane %v2232_v42, 1 }
 0xbbf   :  { %v2238_v4 = vrot.slane %v2237_v43, 2  ;;  %v2234_v7 = vadd.f32 %v2233_v5, %v2232_v42 }
 0xbc1   :  { %v2239_v19 = vadd.f32 %v2238_v4, %v2237_v43 }
 0xbc3   :  { %v2240_v6 = vrot.slane %v2239_v19, 1 }
 0xbc5   :  { %v2241_v13 = vadd.f32 %v2240_v6, %v2239_v19 }
 0xbc7   :  { %v2242_v57 = vadd.f32 %v2241_v13, %v2234_v7 }
 0xbc9   :  { %v2243_v35 = vmul.f32 0.0625, %v2242_v57 }
 0xbcb   :  { %v2244_v8 = vsub.f32 %v2079_v47, %v2243_v35  ;;  %v2245_v28 = vsub.f32 %v2225_v59, %v2243_v35 }
 0xbcd   :  { %v2246_v14 = vmul.f32 %v2244_v8, %v2244_v8  ;;  %v2254_v27 = vmul.f32 %v2245_v28, %v2245_v28 }
 0xbcf   :  { %v2247_v15 = vsel %vm214_vm2, %v2246_v14, 0.0  ;;  %v2255_v17 = vsel %vm214_vm2, %v2254_v27, 0.0 }
 0xbd0   :  { %v2248_v18 = vrot.slane %v2247_v15, 4  ;;  %v2256_v39 = vrot.slane %v2255_v17, 4 }
 0xbd2   :  { %v2249_v40 = vadd.f32 %v2248_v18, %v2247_v15  ;;  %v2257_v44 = vadd.f32 %v2256_v39, %v2255_v17 }
 0xbd4   :  { %v2250_v45 = vrot.slane %v2249_v40, 2  ;;  %v2258_v9 = vrot.slane %v2257_v44, 2 }
 0xbd6   :  { %v2251_v10 = vadd.f32 %v2250_v45, %v2249_v40  ;;  %v2259_v11 = vadd.f32 %v2258_v9, %v2257_v44 }
 0xbd8   :  { %v2252_v12 = vrot.slane %v2251_v10, 1  ;;  %v2260_v21 = vrot.slane %v2259_v11, 1 }
 0xbda   :  { %v2253_v22 = vadd.f32 %v2252_v12, %v2251_v10  ;;  %v2261_v23 = vadd.f32 %v2260_v21, %v2259_v11 }
 0xbdc   :  { %v2262_v24 = vadd.f32 %v2261_v23, %v2253_v22 }
 0xbde   :  { %v2263_v25 = vmul.f32 0.0625, %v2262_v24 }
 0xbe0   :  { %v2264_v26 = vadd.f32 1e-05, %v2263_v25 }
 0xbe2   :  { %3445 = vrsqrt.f32 %v2264_v26  ;;  %v2663_v26 = vld [vmem:[%s4179_s8 + $0x8] sm:$0xff] }
 0xbef   :  { %v3446_v30 = vpop.eup %3445 }
 0xbf0   :  { %v2266_v31 = vmul.f32 %v3446_v30, %v2244_v8  ;;  %v2267_v32 = vmul.f32 %v3446_v30, %v2245_v28  ;;  %v2662_v30 = vld [vmem:[%s4179_s8] sm:$0xff] }
 0xbf2   :  { %v2272_v33 = vmul.f32 0.01, %v2267_v32  ;;  %vm2268_vm9 = vcmp.gt.f32.partialorder %v2266_v31, 0.0  ;;  %v2269_v34 = vmul.f32 0.01, %v2266_v31  ;;  %vm2271_vm10 = vcmp.gt.f32.partialorder %v2267_v32, 0.0 }
 0xbf4   :  { %v2270_v49 = vsel %vm2268_vm9, %v2266_v31, %v2269_v34  ;;  %v2273_v48 = vsel %vm2271_vm10, %v2267_v32, %v2272_v33  ;;  %v3003_v31 = vld [vmem:[%s4180_s14] ss:$0 sm:$0xff] }
 0xbf5   :  { %3298 = vmatmul.mubr.msk.f32.vlgmr.msra.gmra.mxu0 %vm214_vm2, %v2270_v49  ;;  %3305 = vmatmul.mubr.msk.f32.vlgmr.msra.gmra.mxu1 %vm214_vm2, %v2273_v48 }
 0xbf6   :  { %3311 = vmatprep.mubr.msk.f32.mxu0 %vm3536_vm1, %v3535_v2  ;;  %3318 = vmatprep.mubr.msk.f32.mxu1 %vm3536_vm1, %v3535_v2 }
 0xbf7   :  { %3308 = vmatpush3.msra.mxu0 %v2477_v46  ;;  %3315 = vmatpush3.msra.mxu1 %v3005_v37 }
 0xbf8   :  { %3309 = vmatprep.subr.mxu0 %v3535_v2  ;;  %3316 = vmatprep.subr.mxu1 %v3535_v2 }
 0xbf9   :  { %3310 = vmatpush3.msra.mxu0 %v2476_v36  ;;  %3317 = vmatpush3.msra.mxu1 %v3004_v38 }
 0xbfa   :  { %3321 = vmatprep.subr.mxu0 %v3535_v2  ;;  %3328 = vmatprep.subr.mxu1 %v3535_v2 }
 0xcb5   :  { %v2352_v3 = vpop.f32.mrf.mxu0  ;;  %v2425_v20 = vpop.f32.mrf.mxu1 }
 0xcb6   :  { %v2353_v58 = vadd.f32 %v2999_v29, %v2352_v3  ;;  %v2426_v41 = vadd.f32 %v2999_v29, %v2425_v20 }
 0xcb7   :  { %v3299_v55 = vpop.f32.mrf.mxu0  ;;  %v3306_v56 = vpop.f32.mrf.mxu1 }
 0xcb8   :  { %v2429_v63 = vsel %vm214_vm2, %v2353_v58, 0.0  ;;  %v2436_v53 = vsel %vm214_vm2, %v2426_v41, 0.0 }
 0xcb9   :  { %v2430_v0 = vrot.slane %v2429_v63, 4  ;;  %v2437_v47 = vrot.slane %v2436_v53, 4 }
 0xcbb   :  { %v2431_v51 = vadd.f32 %v2430_v0, %v2429_v63  ;;  %v2438_v16 = vadd.f32 %v2437_v47, %v2436_v53 }
 0xcbd   :  { %v2432_v52 = vrot.slane %v2431_v51, 2  ;;  %v2439_v54 = vrot.slane %v2438_v16, 2 }
 0xcbf   :  { %v2433_v50 = vadd.f32 %v2432_v52, %v2431_v51  ;;  %v2440_v59 = vadd.f32 %v2439_v54, %v2438_v16 }
 0xcc1   :  { %v2434_v60 = vrot.slane %v2433_v50, 1  ;;  %v2441_v61 = vrot.slane %v2440_v59, 1 }
 0xcc3   :  { %v2435_v62 = vadd.f32 %v2434_v60, %v2433_v50  ;;  %v2442_v1 = vadd.f32 %v2441_v61, %v2440_v59 }
 0xcc5   :  { %v2443_v42 = vadd.f32 %v2442_v1, %v2435_v62 }
 0xcc7   :  { %v2444_v43 = vmul.f32 0.0625, %v2443_v42 }
 0xcc9   :  { %v2445_v4 = vsub.f32 %v2353_v58, %v2444_v43  ;;  %v2446_v5 = vsub.f32 %v2426_v41, %v2444_v43 }
 0xccb   :  { %v2447_v19 = vmul.f32 %v2445_v4, %v2445_v4  ;;  %v2455_v6 = vmul.f32 %v2446_v5, %v2446_v5 }
 0xccd   :  { %v2448_v7 = vsel %vm214_vm2, %v2447_v19, 0.0  ;;  %v2456_v13 = vsel %vm214_vm2, %v2455_v6, 0.0  ;;  %v3008_v19 = vld [vmem:[%s4182_s24] ss:$0 sm:$0xff] }
 0xcce   :  { %v2449_v57 = vrot.slane %v2448_v7, 4  ;;  %v2457_v35 = vrot.slane %v2456_v13, 4 }
 0xcd0   :  { %v2450_v8 = vadd.f32 %v2449_v57, %v2448_v7  ;;  %v2458_v28 = vadd.f32 %v2457_v35, %v2456_v13 }
 0xcd2   :  { %v2451_v14 = vrot.slane %v2450_v8, 2  ;;  %v2459_v27 = vrot.slane %v2458_v28, 2 }
 0xcd4   :  { %v2452_v15 = vadd.f32 %v2451_v14, %v2450_v8  ;;  %v2460_v17 = vadd.f32 %v2459_v27, %v2458_v28 }
 0xcd6   :  { %v2453_v18 = vrot.slane %v2452_v15, 1  ;;  %v2461_v39 = vrot.slane %v2460_v17, 1 }
 0xcd8   :  { %v2454_v40 = vadd.f32 %v2453_v18, %v2452_v15  ;;  %v2462_v44 = vadd.f32 %v2461_v39, %v2460_v17 }
 0xcda   :  { %v2463_v45 = vadd.f32 %v2462_v44, %v2454_v40 }
 0xcdc   :  { %v2464_v9 = vmul.f32 0.0625, %v2463_v45 }
 0xcde   :  { %v2465_v10 = vadd.f32 1e-05, %v2464_v9 }
 0xce0   :  { %3447 = vrsqrt.f32 %v2465_v10 }
 0xced   :  { %v3448_v11 = vpop.eup %3447 }
 0xcee   :  { %v2467_v12 = vmul.f32 %v3448_v11, %v2445_v4  ;;  %v2468_v21 = vmul.f32 %v3448_v11, %v2446_v5  ;;  %v2772_v4 = vld [vmem:[%s4181_s19 + $0x8] sm:$0xff]  ;;  %v2771_v5 = vld [vmem:[%s4181_s19] sm:$0xff] }
 0xcf0   :  { %v2473_v22 = vmul.f32 0.2, %v2468_v21  ;;  %vm2469_vm11 = vcmp.gt.f32.partialorder %v2467_v12, 0.0  ;;  %v2470_v23 = vmul.f32 0.2, %v2467_v12  ;;  %vm2472_vm12 = vcmp.gt.f32.partialorder %v2468_v21, 0.0 }
 0xcf2   :  { %v2471_v24 = vsel %vm2469_vm11, %v2467_v12, %v2470_v23  ;;  %v2474_v25 = vsel %vm2472_vm12, %v2468_v21, %v2473_v22 }
 0xcf3   :  { %3312 = vmatmul.mubr.msk.f32.vlgmr.msra.gmra.mxu0 %vm214_vm2, %v2471_v24  ;;  %3319 = vmatmul.mubr.msk.f32.vlgmr.msra.gmra.mxu1 %vm214_vm2, %v2474_v25 }
 0xcf4   :  { %3325 = vmatprep.mubr.msk.f32.mxu0 %vm3536_vm1, %v3535_v2  ;;  %3332 = vmatprep.mubr.msk.f32.mxu1 %vm3536_vm1, %v3535_v2 }
 0xcf5   :  { %3322 = vmatpush3.msra.mxu0 %v2663_v26  ;;  %3329 = vmatpush3.msra.mxu1 %v2772_v4 }
 0xcf6   :  { %3323 = vmatprep.subr.mxu0 %v3535_v2  ;;  %3330 = vmatprep.subr.mxu1 %v3535_v2 }
 0xcf7   :  { %3324 = vmatpush3.msra.mxu0 %v2662_v30  ;;  %3331 = vmatpush3.msra.mxu1 %v2771_v5 }
 0xdb3   :  { %v2547_v32 = vpop.f32.mrf.mxu0  ;;  %v2630_v33 = vpop.f32.mrf.mxu1 }
 0xdb4   :  { %v2557_v34 = vadd.f32 %v3003_v31, %v2547_v32 }
 0xdb5   :  { %v3313_v49 = vpop.f32.mrf.mxu0  ;;  %v3320_v48 = vpop.f32.mrf.mxu1 }
 0xdb6   :  { %v2634_v46 = vadd.f32 %v2630_v33, %v2557_v34 }
 0xdb8   :  { %v2635_v37 = vsel %vm214_vm2, %v2634_v46, 0.0 }
 0xdb9   :  { %v2636_v36 = vrot.slane %v2635_v37, 4 }
 0xdbb   :  { %v2637_v38 = vadd.f32 %v2636_v36, %v2635_v37 }
 0xdbd   :  { %v2638_v29 = vrot.slane %v2637_v38, 2 }
 0xdbf   :  { %v2639_v3 = vadd.f32 %v2638_v29, %v2637_v38 }
 0xdc1   :  { %v2640_v20 = vrot.slane %v2639_v3, 1 }
 0xdc3   :  { %v2641_v58 = vadd.f32 %v2640_v20, %v2639_v3 }
 0xdc5   :  { %v2642_v41 = vmul.f32 0.125, %v2641_v58 }
 0xdc7   :  { %v2643_v55 = vsub.f32 %v2634_v46, %v2642_v41 }
 0xdc9   :  { %v2644_v56 = vmul.f32 %v2643_v55, %v2643_v55 }
 0xdcb   :  { %v2645_v63 = vsel %vm214_vm2, %v2644_v56, 0.0 }
 0xdcc   :  { %v2646_v53 = vrot.slane %v2645_v63, 4 }
 0xdce   :  { %v2647_v0 = vadd.f32 %v2646_v53, %v2645_v63 }
 0xdd0   :  { %v2648_v47 = vrot.slane %v2647_v0, 2 }
 0xdd2   :  { %v2649_v51 = vadd.f32 %v2648_v47, %v2647_v0 }
 0xdd4   :  { %v2650_v16 = vrot.slane %v2649_v51, 1 }
 0xdd6   :  { %v2651_v52 = vadd.f32 %v2650_v16, %v2649_v51 }
 0xdd8   :  { %v2652_v54 = vmul.f32 0.125, %v2651_v52 }
 0xdda   :  { %v2653_v50 = vadd.f32 1e-05, %v2652_v54 }
 0xddc   :  { %3449 = vrsqrt.f32 %v2653_v50 }
 0xde9   :  { %v3450_v59 = vpop.eup %3449 }
 0xdea   :  { %v2655_v60 = vmul.f32 %v3450_v59, %v2643_v55 }
 0xdec   :  { %v2657_v61 = vmin.f32 %v2655_v60, 0.0  ;;  %vm2656_vm1 = vcmp.gt.f32.partialorder %v2655_v60, 0.0 }
 0xdee   :  { %v2658_v62 = vmul.f32 1.442695, %v2657_v61 }
 0xdf0   :  { %3451 = vpow2.f32 %v2658_v62 }
 0xdfd   :  { %v3452_v1 = vpop.eup %3451 }
 0xdfe   :  { %v3007_v42 = vadd.f32 -1.0, %v3452_v1 }
 0xe00   :  { %v2661_v43 = vsel %vm2656_vm1, %v2655_v60, %v3007_v42 }
 0xe01   :  { %3326 = vmatmul.mubr.msk.f32.vlgmr.msra.gmra.mxu0 %vm214_vm2, %v2661_v43 }
 0xec1   :  { %v2740_v6 = vpop.f32.mrf.mxu0 }
 0xec2   :  { %v2741_v7 = vadd.f32 %v3008_v19, %v2740_v6 }
 0xec3   :  { %v3327_v13 = vpop.f32.mrf.mxu0 }
 0xec4   :  { %v2744_v57 = vsel %vm214_vm2, %v2741_v7, 0.0 }
 0xec5   :  { %v2745_v35 = vrot.slane %v2744_v57, 4 }
 0xec7   :  { %v2746_v8 = vadd.f32 %v2745_v35, %v2744_v57 }
 0xec9   :  { %v2747_v28 = vrot.slane %v2746_v8, 2 }
 0xecb   :  { %v2748_v14 = vadd.f32 %v2747_v28, %v2746_v8 }
 0xecd   :  { %v2749_v27 = vrot.slane %v2748_v14, 1 }
 0xecf   :  { %v2750_v15 = vadd.f32 %v2749_v27, %v2748_v14 }
 0xed1   :  { %v2751_v17 = vmul.f32 0.125, %v2750_v15 }
 0xed3   :  { %v2752_v18 = vsub.f32 %v2741_v7, %v2751_v17 }
 0xed5   :  { %v2753_v39 = vmul.f32 %v2752_v18, %v2752_v18 }
 0xed7   :  { %v2754_v40 = vsel %vm214_vm2, %v2753_v39, 0.0 }
 0xed8   :  { %v2755_v44 = vrot.slane %v2754_v40, 4 }
 0xeda   :  { %v2756_v2 = vadd.f32 %v2755_v44, %v2754_v40 }
 0xedc   :  { %v2757_v45 = vrot.slane %v2756_v2, 2 }
 0xede   :  { %v2758_v9 = vadd.f32 %v2757_v45, %v2756_v2 }
 0xee0   :  { %v2759_v10 = vrot.slane %v2758_v9, 1 }
 0xee2   :  { %v2760_v11 = vadd.f32 %v2759_v10, %v2758_v9 }
 0xee4   :  { %v2761_v12 = vmul.f32 0.125, %v2760_v11 }
 0xee6   :  { %v2762_v21 = vadd.f32 1e-05, %v2761_v12 }
 0xee8   :  { %3453 = vrsqrt.f32 %v2762_v21 }
 0xef5   :  { %v3454_v22 = vpop.eup %3453 }
 0xef6   :  { %v2764_v23 = vmul.f32 %v3454_v22, %v2752_v18 }
 0xef8   :  { %v2766_v24 = vmin.f32 %v2764_v23, 0.0  ;;  %vm2765_vm13 = vcmp.gt.f32.partialorder %v2764_v23, 0.0 }
 0xefa   :  { %v2767_v25 = vmul.f32 1.442695, %v2766_v24 }
 0xefc   :  { %3455 = vpow2.f32 %v2767_v25 }
 0xf09   :  { %v3456_v26 = vpop.eup %3455 }
 0xf0a   :  { %v3010_v30 = vadd.f32 -1.0, %v3456_v26 }
 0xf0c   :  { %v2770_v31 = vsel %vm2765_vm13, %v2764_v23, %v3010_v30 }
 0xf0d   :  { %3333 = vmatmul.mubr.msk.f32.vlgmr.msra.gmra.mxu1 %vm214_vm2, %v2770_v31 }
 0xf0e   :  { %3472 = shalt.err (!%p3469_p4)
}
 0xf0f   :  { %2900 = dma.vmem_to_hbm [thread:$0]  %s2898_s6, 128, %s3692_s4, [#allocation5]   ;;  %v3011_v32 = vld [vmem:[%s3682_s20] ss:$0 sm:$0xff] }
 0xf10   :  { %s3538_s20 = smov [#allocation2]  }
 0xf11   :  { %s2887_s4 = sshll.u32 %s3538_s20, 4  ;;  %s2888_s4 = int_to_ptr.vmem [resolvable:$true] %s2887_s4 }
 0xf12   :  { %s3481_s15 = scalar_lea.vmem %s2888_s4, 128  ;;  %p3486_p6 = scmp.lt.s32.totalorder %s2888_s4, %s2888_s4 }
 0xf13   :  { %p3482_p5 = scmp.ne.s32.totalorder %s2888_s4, %s3481_s15  ;;  %p3487_p7 = scmp.lt.s32.totalorder %s3481_s15, %s3481_s15 }
 0xf15   :  { %p3488_p8 = por %p3487_p7, %p3486_p6 }
 0xf17   :  { %p3489_p9 = pnand %p3488_p8, %p3482_p5 }
 0xfcd   :  { %v2849_v33 = vpop.f32.mrf.mxu1 }
 0xfce   :  { %v2850_v34 = vadd.f32 %v3011_v32, %v2849_v33 }
 0xfcf   :  { %v3334_v49 = vpop.f32.mrf.mxu1 }
 0xfd0   :  { %v2853_v48 = vsel %vm140_vm0, %v2850_v34, 0.0 }
 0xfd1   :  { %v2854_v46 = vrot.slane %v2853_v48, 4 }
 0xfd3   :  { %v2855_v37 = vadd.f32 %v2854_v46, %v2853_v48 }
 0xfd5   :  { %v2856_v36 = vrot.slane %v2855_v37, 2 }
 0xfd7   :  { %v2857_v38 = vadd.f32 %v2856_v36, %v2855_v37 }
 0xfd9   :  { %v2858_v29 = vrot.slane %v2857_v38, 1 }
 0xfdb   :  { %v2859_v3 = vadd.f32 %v2858_v29, %v2857_v38 }
 0xfdd   :  { %v2860_v20 = vmul.f32 0.125, %v2859_v3 }
 0xfdf   :  { %v2861_v58 = vsub.f32 %v2850_v34, %v2860_v20 }
 0xfe1   :  { %v2862_v41 = vmul.f32 %v2861_v58, %v2861_v58 }
 0xfe3   :  { %v2863_v55 = vsel %vm140_vm0, %v2862_v41, 0.0 }
 0xfe4   :  { %v2864_v56 = vrot.slane %v2863_v55, 4 }
 0xfe6   :  { %v2865_v63 = vadd.f32 %v2864_v56, %v2863_v55 }
 0xfe8   :  { %v2866_v53 = vrot.slane %v2865_v63, 2 }
 0xfea   :  { %v2867_v0 = vadd.f32 %v2866_v53, %v2865_v63 }
 0xfec   :  { %v2868_v47 = vrot.slane %v2867_v0, 1 }
 0xfee   :  { %v2869_v51 = vadd.f32 %v2868_v47, %v2867_v0 }
 0xff0   :  { %v2870_v16 = vmul.f32 0.125, %v2869_v51 }
 0xff2   :  { %v2871_v52 = vadd.f32 1e-05, %v2870_v16 }
 0xff4   :  { %3457 = vrsqrt.f32 %v2871_v52 }
0x1001   :  { %v3458_v54 = vpop.eup %3457 }
0x1002   :  { %v2873_v50 = vmul.f32 %v3458_v54, %v2861_v58 }
0x1004   :  { %v2875_v59 = vmin.f32 %v2873_v50, 0.0  ;;  %vm2874_vm2 = vcmp.gt.f32.partialorder %v2873_v50, 0.0 }
0x1006   :  { %v2876_v60 = vmul.f32 1.442695, %v2875_v59 }
0x1008   :  { %3459 = vpow2.f32 %v2876_v60 }
0x1015   :  { %v3460_v61 = vpop.eup %3459 }
0x1016   :  { %v3013_v62 = vadd.f32 -1.0, %v3460_v61 }
0x1018   :  { %v2879_v1 = vsel %vm2874_vm2, %v2873_v50, %v3013_v62 }
0x1019   :  { %2880 = vst.msk [vmem:[#allocation2] sm:$0xff] %vm140_vm0, %v2879_v1 }
0x101a   :  { %3492 = shalt.err (!%p3489_p9)
}
0x101b   :  { %2890 = dma.vmem_to_hbm [thread:$0]  %s2888_s4, 128, %s3687_s27, [#allocation3]  }
0x101c   :  { %3501 = dma.done.wait [#allocation3], 128  }
0x101d   :  { %3502 = vsyncadd [#allocation3], 4294967168 }
0x101e   :  { %3503 = dma.done.wait [#allocation5], 128  }
0x101f   :  { %3504 = vsyncadd [#allocation5], 4294967168 }
0x1020   :  { %2911 = vsyncpa [#allocation3], 1 }
0x1021   :  { %2912 = vsyncpa [#allocation5], 1 }

</bundles_post_ra>
